<compile_context>
chip_gen: v5e
topology: v5e:2x2
jax: 0.10.0
libtpu: 0.0.40
codegen_flags: <defaults>
</compile_context>

<pallas_src>
import functools

import jax
import jax.numpy as jnp
import numpy as np
from jax import lax
from jax.experimental import pallas as pl
from jax.experimental.pallas import tpu as pltpu


def _round_up(v, m):
    return ((v + m - 1) // m) * m


def _tpu_generation():
    try:
        kind = jax.devices()[0].device_kind.lower()
    except Exception:
        return 6
    for g in (7, 6, 5, 4):
        if "v%d" % g in kind:
            return g
    return 6


def _pick_q_tile(nq, tmax):
    # Largest query tile <= tmax that divides N and leaves >= 2 pipeline steps.
    for t in (512, 256, 128, 64, 32, 16, 8):
        if t <= tmax and nq % t == 0 and nq // t >= 2:
            return t
    return nq


def _pick_proj_chunk(ns):
    # Bound the (chunk, 2*Cip) f32 temporary of the once-per-batch projection.
    if ns <= 1024:
        return ns
    for t in (1024, 512, 256):
        if ns % t == 0:
            return t
    return ns


def _nonlocal_kernel(x_ref, wt_ref, bt_ref, wpg_ref, bpg_ref, ww_ref, bw_ref,
                     out_ref, phi_sc, g_sc, *, ones_col, proj_chunk, exp_bf16):
    n = x_ref.shape[1]           # N = 4 * Ns (slab-ordered pixels)
    ns = n // 4                  # pooled spatial size
    cip = wt_ref.shape[1]        # padded inter_channels
    tn = out_ref.shape[1]        # query tile size
    qt = pl.program_id(2)

    # ---- once per (core-split, batch): fused phi|g projection + 2x2 max-pool,
    # chunked over pooled rows so the f32 temp is (chunk, 2*Cip) not (N, 2*Cip)
    @pl.when(qt == 0)
    def _():
        for c0 in range(0, ns, proj_chunk):
            def slab(k, _c0=c0):
                return jnp.dot(x_ref[0, pl.ds(k * ns + _c0, proj_chunk), :],
                               wpg_ref[...], preferred_element_type=jnp.float32)
            # per-channel bias commutes with the max, so bias-after-max is exact;
            # bpg carries 1.0 in g's `ones_col` lane (folded softmax denominator)
            pooled = (jnp.maximum(jnp.maximum(slab(0), slab(1)),
                                  jnp.maximum(slab(2), slab(3)))
                      + bpg_ref[...])                             # (chunk, 2*Cip)
            phi_sc[pl.ds(c0, proj_chunk), :] = pooled[:, :cip].astype(jnp.bfloat16)
            g_sc[pl.ds(c0, proj_chunk), :] = pooled[:, cip:].astype(jnp.bfloat16)

    # ---- per query tile ------------------------------------------------------
    qglob = pl.program_id(0) * pl.num_programs(2) + qt
    q0 = pl.multiple_of(qglob * tn, tn)
    xq = x_ref[0, pl.ds(q0, tn), :]                               # (TN, Cp) bf16

    theta = (jnp.dot(xq, wt_ref[...], preferred_element_type=jnp.float32)
             + bt_ref[...]).astype(jnp.bfloat16)                  # (TN, Cip)

    # f = theta @ phi^T as an NT contraction (no materialized transpose)
    f = lax.dot_general(theta, phi_sc[...],
                        dimension_numbers=(((1,), (1,)), ((), ())),
                        preferred_element_type=jnp.float32)       # (TN, Ns)

    fm = f - jnp.max(f, axis=-1, keepdims=True)
    # softmax denominator is folded into the PV matmul via g's ones-column, so
    # there is no cross-lane sum or (TN, Ns) elementwise normalize here.
    if exp_bf16:
        p = jnp.exp(fm.astype(jnp.bfloat16))                      # bf16 EUP (v6e/v7x)
    else:
        p = jnp.exp(fm).astype(jnp.bfloat16)                      # f32 EUP (v5e)

    y_un = jnp.dot(p, g_sc[...], preferred_element_type=jnp.float32)  # (TN, Cip)
    denom = y_un[:, ones_col:ones_col + 1]                        # = sum_k exp(f-m)
    y = (y_un * pl.reciprocal(denom, approx=True)).astype(jnp.bfloat16)

    # W (1x1 conv) with conv bias + eval-mode BatchNorm pre-folded on the host;
    # w_w's row `ones_col` is zero-padded so the ones-column never leaks.
    wy = jnp.dot(y, ww_ref[...], preferred_element_type=jnp.float32) + bw_ref[...]
    out_ref[0] = wy.astype(out_ref.dtype)                         # W_y only (bf16)


def nonlocal_block_2d(x_nchw, kp):
    """x_nchw: (B, C, H, W) float32 -> z = W_y + x, (B, C, H, W) float32."""
    B, C, H, W = x_nchw.shape
    assert H % 2 == 0 and W % 2 == 0, "2x2 max-pool sub-sampling needs even H, W"
    Cp, Cip = kp["w_theta"].shape          # padded channel widths
    Ci = kp["inter_channels"]              # true inter_channels (< Cip)
    N = H * W
    Ns = (H // 2) * (W // 2)

    gen = _tpu_generation()
    exp_bf16 = gen >= 6                    # v5e has no bf16 VPU/EUP
    vmem_limit = (48 if gen >= 7 else 100) * 1024 * 1024
    TN = _pick_q_tile(N, 256 if gen >= 7 else 512)
    NQ = N // TN
    # query-axis core split so an odd/one-batch call still fills both v7x TCs
    QS = 2 if (gen >= 7 and B % 2 == 1 and NQ % 2 == 0) else 1
    NPS = NQ // QS

    # slab order (bf16 halves the HBM round trip of the permutes): row (k, si)
    # with k = 2*di + dj the 2x2-window position, si the row-major pooled index
    x_nhwc = jnp.transpose(x_nchw, (0, 2, 3, 1)).astype(jnp.bfloat16)
    x_nhwc = jnp.pad(x_nhwc, ((0, 0), (0, 0), (0, 0), (0, Cp - C)))
    x_slab = (x_nhwc.reshape(B, H // 2, 2, W // 2, 2, Cp)
              .transpose(0, 2, 4, 1, 3, 5)
              .reshape(B, N, Cp))

    kernel = functools.partial(_nonlocal_kernel, ones_col=Ci,
                               proj_chunk=_pick_proj_chunk(Ns),
                               exp_bf16=exp_bf16)

    def full(shape):
        nd = len(shape)
        return pl.BlockSpec(shape, lambda s, b, q, _nd=nd: (0,) * _nd)

    wy_slab = pl.pallas_call(
        kernel,
        out_shape=jax.ShapeDtypeStruct((B, N, Cp), jnp.bfloat16),
        grid=(QS, B, NPS),
        in_specs=[
            # whole-batch activations stay resident across the query-tile axis
            # (block index only changes with b, so it is re-fetched once per batch)
            pl.BlockSpec((1, N, Cp), lambda s, b, q: (b, 0, 0)),
            full((Cp, Cip)), full((1, Cip)),          # theta
            full((Cp, 2 * Cip)), full((1, 2 * Cip)),  # fused phi | g (+ ones col)
            full((Cip, Cp)), full((1, Cp)),           # W conv (bias + BN folded)
        ],
        out_specs=pl.BlockSpec((1, TN, Cp),
                               lambda s, b, q: (b, s * NPS + q, 0)),
        scratch_shapes=[pltpu.VMEM((Ns, Cip), jnp.bfloat16),   # phi (pooled)
                        pltpu.VMEM((Ns, Cip), jnp.bfloat16)],  # g   (pooled)
        compiler_params=pltpu.CompilerParams(
            dimension_semantics=("parallel", "parallel", "arbitrary"),
            vmem_limit_bytes=vmem_limit),
    )(x_slab,
      kp["w_theta"], kp["b_theta"], kp["w_phig"], kp["b_phig"],
      kp["w_w"], kp["b_w"])

    # un-permute slab order -> row-major (H, W), drop channel padding; residual
    # is added here from the original f32 x (exact identity path when gamma==0)
    wy = (wy_slab.reshape(B, 2, 2, H // 2, W // 2, Cp)
          .transpose(0, 3, 1, 4, 2, 5)
          .reshape(B, H, W, Cp)[..., :C])
    return x_nchw + jnp.transpose(wy, (0, 3, 1, 2)).astype(jnp.float32)


# ---------------- parameter setup (deterministic, torch-style shapes) -------

def init_params(key, in_channels, inter_channels=None):
    if inter_channels is None:
        inter_channels = in_channels // 2
        if inter_channels == 0:
            inter_channels = 1
    C, Ci = in_channels, inter_channels
    ks = jax.random.split(key, 8)

    def conv_init(kw, kb, fan_out, fan_in):
        bound = 1.0 / np.sqrt(fan_in)
        w = jax.random.uniform(kw, (fan_out, fan_in), jnp.float32, -bound, bound)
        b = jax.random.uniform(kb, (fan_out,), jnp.float32, -bound, bound)
        return w, b

    wt, bt = conv_init(ks[0], ks[1], Ci, C)     # theta
    wp, bp = conv_init(ks[2], ks[3], Ci, C)     # phi
    wg, bg = conv_init(ks[4], ks[5], Ci, C)     # g
    ww, bw = conv_init(ks[6], ks[7], C, Ci)     # W (conv part of nn.Sequential)
    # bn_layer=True: nn.init.constant_(W[1].weight, 0); nn.init.constant_(W[1].bias, 0)
    return dict(
        wt=wt, bt=bt, wp=wp, bp=bp, wg=wg, bg=bg, ww=ww, bw=bw,
        gamma=jnp.zeros((C,), jnp.float32), beta=jnp.zeros((C,), jnp.float32),
        mean=jnp.zeros((C,), jnp.float32), var=jnp.ones((C,), jnp.float32),
        eps=1e-5,
    )


def to_kernel_params(tp):
    # TODO(synk): BatchNorm is implemented in eval mode (folded affine from running
    # stats); training-mode batch statistics are not reproduced (irrelevant here
    # since the module zero-initializes gamma/beta, making W_y == 0 either way).
    Ci, C = tp["wt"].shape
    Cp = _round_up(C, 128)
    # guarantee at least one spare lane past Ci for the softmax ones-column
    Cip = Ci + 128 if Ci % 128 == 0 else _round_up(Ci, 128)

    scale = tp["gamma"] / jnp.sqrt(tp["var"] + tp["eps"])
    shift = tp["beta"] - tp["mean"] * scale

    def pad2(a, r, c):
        return jnp.pad(a, ((0, r - a.shape[0]), (0, c - a.shape[1])))

    def pad_row(v, c):
        return jnp.pad(v[None, :], ((0, 0), (0, c - v.shape[0])))

    # g's bias carries 1.0 in the first padded lane -> pooled g gets a constant
    # ones-column whose PV-matmul output equals the softmax denominator.
    b_g = pad_row(tp["bg"], Cip).at[0, Ci].set(1.0)
    return dict(
        inter_channels=int(Ci),
        w_theta=pad2(tp["wt"].T, Cp, Cip).astype(jnp.bfloat16),
        b_theta=pad_row(tp["bt"], Cip),
        w_phig=jnp.concatenate([pad2(tp["wp"].T, Cp, Cip),
                                pad2(tp["wg"].T, Cp, Cip)],
                               axis=1).astype(jnp.bfloat16),
        b_phig=jnp.concatenate([pad_row(tp["bp"], Cip), b_g], axis=1),
        # fold conv bias + eval-mode BN into the W weights / shift
        w_w=pad2(tp["ww"].T * scale[None, :], Cip, Cp).astype(jnp.bfloat16),
        b_w=pad_row(tp["bw"] * scale + shift, Cp),
    )


# ---------------- pure-JAX reference (mirrors the torch forward) ------------

def reference(x, tp):
    B, C, H, W = x.shape
    Ci = tp["wt"].shape[0]

    def conv1x1(v, w, b):
        return jnp.einsum("bchw,oc->bohw", v, w) + b[None, :, None, None]

    def pool(v):
        return jnp.max(v.reshape(B, Ci, H // 2, 2, W // 2, 2), axis=(3, 5))

    g_x = pool(conv1x1(x, tp["wg"], tp["bg"])).reshape(B, Ci, -1).transpose(0, 2, 1)
    theta = conv1x1(x, tp["wt"], tp["bt"]).reshape(B, Ci, -1).transpose(0, 2, 1)
    phi = pool(conv1x1(x, tp["wp"], tp["bp"])).reshape(B, Ci, -1)
    f = theta @ phi
    fdc = jax.nn.softmax(f, axis=-1)
    y = (fdc @ g_x).transpose(0, 2, 1).reshape(B, Ci, H, W)
    wy = conv1x1(y, tp["ww"], tp["bw"])
    wy = (tp["gamma"][None, :, None, None]
          * (wy - tp["mean"][None, :, None, None])
          / jnp.sqrt(tp["var"][None, :, None, None] + tp["eps"])
          + tp["beta"][None, :, None, None])
    return wy + x


if __name__ == "__main__":
    key = jax.random.PRNGKey(0)
    kx, kparam = jax.random.split(key)
    B, C, H, W = 2, 4, 16, 16
    x = jax.random.normal(kx, (B, C, H, W), jnp.float32)

    # faithful module init (BN gamma/beta == 0 => W_y == 0, z == x exactly)
    tp = init_params(kparam, in_channels=C)
    out = jax.block_until_ready(nonlocal_block_2d(x, to_kernel_params(tp)))
    ref = reference(x, tp)
    np.testing.assert_allclose(np.asarray(out), np.asarray(ref),
                               rtol=2e-2, atol=2e-2)

    # self-test with a non-degenerate BN affine so the attention path is checked
    tp2 = dict(tp)
    tp2["gamma"] = jnp.full((C,), 0.5, jnp.float32)
    tp2["beta"] = jnp.full((C,), 0.1, jnp.float32)
    out2 = jax.block_until_ready(nonlocal_block_2d(x, to_kernel_params(tp2)))
    ref2 = reference(x, tp2)
    # bf16 activations / unnormalized-softmax fold => loosened tolerances
    np.testing.assert_allclose(np.asarray(out2), np.asarray(ref2),
                               rtol=5e-2, atol=1e-1)

    print("KERNEL_OK")
</pallas_src>

<mosaic_0001>
module attributes {stable_mosaic.version = 11 : i64} {
  func.func @_nonlocal_kernel(%arg0: i32, %arg1: i32, %arg2: i32, %arg3: memref<1x256x128xbf16, #tpu.memory_space<vmem>>, %arg4: memref<128x128xbf16, #tpu.memory_space<vmem>>, %arg5: memref<1x128xf32, #tpu.memory_space<vmem>>, %arg6: memref<128x256xbf16, #tpu.memory_space<vmem>>, %arg7: memref<1x256xf32, #tpu.memory_space<vmem>>, %arg8: memref<128x128xbf16, #tpu.memory_space<vmem>>, %arg9: memref<1x128xf32, #tpu.memory_space<vmem>>, %arg10: memref<1x128x128xbf16, #tpu.memory_space<vmem>>, %arg11: memref<64x128xbf16, #tpu.memory_space<vmem>>, %arg12: memref<64x128xbf16, #tpu.memory_space<vmem>>) attributes {dimension_semantics = [#tpu.dimension_semantics<parallel>, #tpu.dimension_semantics<parallel>, #tpu.dimension_semantics<arbitrary>], iteration_bounds = array<i64: 1, 2, 2>, scalar_prefetch = 0 : i64, scratch_operands = 2 : i64, tpu.core_type = #tpu.core_type<tc>, window_params = [{transform_indices = @transform_0, window_bounds = array<i64: 1, 256, 128>}, {pipeline_mode = #tpu.pipeline_mode<synchronous>, transform_indices = @transform_1, window_bounds = array<i64: 128, 128>}, {pipeline_mode = #tpu.pipeline_mode<synchronous>, transform_indices = @transform_2, window_bounds = array<i64: 1, 128>}, {pipeline_mode = #tpu.pipeline_mode<synchronous>, transform_indices = @transform_3, window_bounds = array<i64: 128, 256>}, {pipeline_mode = #tpu.pipeline_mode<synchronous>, transform_indices = @transform_4, window_bounds = array<i64: 1, 256>}, {pipeline_mode = #tpu.pipeline_mode<synchronous>, transform_indices = @transform_5, window_bounds = array<i64: 128, 128>}, {pipeline_mode = #tpu.pipeline_mode<synchronous>, transform_indices = @transform_6, window_bounds = array<i64: 1, 128>}, {transform_indices = @transform_7, window_bounds = array<i64: 1, 128, 128>}]} {
    %c0_i32 = arith.constant 0 : i32
    %0 = arith.cmpi eq, %arg2, %c0_i32 : i32
    %1 = arith.extui %0 : i1 to i32
    %c0_i32_0 = arith.constant 0 : i32
    %2 = arith.cmpi ne, %1, %c0_i32_0 : i32
    scf.if %2 {
      %c0_21 = arith.constant 0 : index
      %c0_22 = arith.constant 0 : index
      %c0_23 = arith.constant 0 : index
      %40 = vector.load %arg3[%c0_21, %c0_22, %c0_23] : memref<1x256x128xbf16, #tpu.memory_space<vmem>>, vector<1x64x128xbf16>
      %41 = vector.shape_cast %40 : vector<1x64x128xbf16> to vector<64x128xbf16>
      %c0_24 = arith.constant 0 : index
      %c0_25 = arith.constant 0 : index
      %42 = vector.load %arg6[%c0_24, %c0_25] : memref<128x256xbf16, #tpu.memory_space<vmem>>, vector<128x256xbf16>
      %cst_26 = arith.constant dense<0.000000e+00> : vector<64x256xf32>
      %43 = tpu.matmul %41, %42, %cst_26 {dimension_numbers = #tpu.dot_dimension_numbers<[1], [0], [0], [1], [0, 0, 1, 1], [], []>} : vector<64x128xbf16>, vector<128x256xbf16>, vector<64x256xf32> -> vector<64x256xf32>
      %c0_27 = arith.constant 0 : index
      %c64 = arith.constant 64 : index
      %c0_28 = arith.constant 0 : index
      %44 = vector.load %arg3[%c0_27, %c64, %c0_28] : memref<1x256x128xbf16, #tpu.memory_space<vmem>>, vector<1x64x128xbf16>
      %45 = vector.shape_cast %44 : vector<1x64x128xbf16> to vector<64x128xbf16>
      %c0_29 = arith.constant 0 : index
      %c0_30 = arith.constant 0 : index
      %46 = vector.load %arg6[%c0_29, %c0_30] : memref<128x256xbf16, #tpu.memory_space<vmem>>, vector<128x256xbf16>
      %cst_31 = arith.constant dense<0.000000e+00> : vector<64x256xf32>
      %47 = tpu.matmul %45, %46, %cst_31 {dimension_numbers = #tpu.dot_dimension_numbers<[1], [0], [0], [1], [0, 0, 1, 1], [], []>} : vector<64x128xbf16>, vector<128x256xbf16>, vector<64x256xf32> -> vector<64x256xf32>
      %48 = arith.maximumf %43, %47 : vector<64x256xf32>
      %c0_32 = arith.constant 0 : index
      %c128 = arith.constant 128 : index
      %c0_33 = arith.constant 0 : index
      %49 = vector.load %arg3[%c0_32, %c128, %c0_33] : memref<1x256x128xbf16, #tpu.memory_space<vmem>>, vector<1x64x128xbf16>
      %50 = vector.shape_cast %49 : vector<1x64x128xbf16> to vector<64x128xbf16>
      %c0_34 = arith.constant 0 : index
      %c0_35 = arith.constant 0 : index
      %51 = vector.load %arg6[%c0_34, %c0_35] : memref<128x256xbf16, #tpu.memory_space<vmem>>, vector<128x256xbf16>
      %cst_36 = arith.constant dense<0.000000e+00> : vector<64x256xf32>
      %52 = tpu.matmul %50, %51, %cst_36 {dimension_numbers = #tpu.dot_dimension_numbers<[1], [0], [0], [1], [0, 0, 1, 1], [], []>} : vector<64x128xbf16>, vector<128x256xbf16>, vector<64x256xf32> -> vector<64x256xf32>
      %c0_37 = arith.constant 0 : index
      %c192 = arith.constant 192 : index
      %c0_38 = arith.constant 0 : index
      %53 = vector.load %arg3[%c0_37, %c192, %c0_38] : memref<1x256x128xbf16, #tpu.memory_space<vmem>>, vector<1x64x128xbf16>
      %54 = vector.shape_cast %53 : vector<1x64x128xbf16> to vector<64x128xbf16>
      %c0_39 = arith.constant 0 : index
      %c0_40 = arith.constant 0 : index
      %55 = vector.load %arg6[%c0_39, %c0_40] : memref<128x256xbf16, #tpu.memory_space<vmem>>, vector<128x256xbf16>
      %cst_41 = arith.constant dense<0.000000e+00> : vector<64x256xf32>
      %56 = tpu.matmul %54, %55, %cst_41 {dimension_numbers = #tpu.dot_dimension_numbers<[1], [0], [0], [1], [0, 0, 1, 1], [], []>} : vector<64x128xbf16>, vector<128x256xbf16>, vector<64x256xf32> -> vector<64x256xf32>
      %57 = arith.maximumf %52, %56 : vector<64x256xf32>
      %58 = arith.maximumf %48, %57 : vector<64x256xf32>
      %c0_42 = arith.constant 0 : index
      %c0_43 = arith.constant 0 : index
      %59 = vector.load %arg7[%c0_42, %c0_43] : memref<1x256xf32, #tpu.memory_space<vmem>>, vector<1x256xf32>
      %60 = vector.broadcast %59 : vector<1x256xf32> to vector<64x256xf32>
      %61 = arith.addf %58, %60 : vector<64x256xf32>
      %62 = vector.extract_strided_slice %61 {offsets = [0, 0], sizes = [64, 128], strides = [1, 1]} : vector<64x256xf32> to vector<64x128xf32>
      %63 = arith.truncf %62 : vector<64x128xf32> to vector<64x128xbf16>
      %c0_44 = arith.constant 0 : index
      %c0_45 = arith.constant 0 : index
      %64 = vector.load %arg11[%c0_44, %c0_45] : memref<64x128xbf16, #tpu.memory_space<vmem>>, vector<64x128xbf16>
      tpu.vector_store %arg11[%c0_44, %c0_45], %63 {strides = array<i32>} : memref<64x128xbf16, #tpu.memory_space<vmem>>, vector<64x128xbf16>,
      %65 = vector.extract_strided_slice %61 {offsets = [0, 128], sizes = [64, 128], strides = [1, 1]} : vector<64x256xf32> to vector<64x128xf32>
      %66 = arith.truncf %65 : vector<64x128xf32> to vector<64x128xbf16>
      %c0_46 = arith.constant 0 : index
      %c0_47 = arith.constant 0 : index
      %67 = vector.load %arg12[%c0_46, %c0_47] : memref<64x128xbf16, #tpu.memory_space<vmem>>, vector<64x128xbf16>
      tpu.vector_store %arg12[%c0_46, %c0_47], %66 {strides = array<i32>} : memref<64x128xbf16, #tpu.memory_space<vmem>>, vector<64x128xbf16>,
    } else {
    }
    %c2_i32 = arith.constant 2 : i32
    %3 = arith.muli %arg0, %c2_i32 : i32
    %4 = arith.addi %3, %arg2 : i32
    %c128_i32 = arith.constant 128 : i32
    %5 = arith.muli %4, %c128_i32 : i32
    %6 = tpu.assume_multiple %5, 128 : i32
    %c0 = arith.constant 0 : index
    %7 = arith.index_cast %6 : i32 to index
    %c0_1 = arith.constant 0 : index
    %8 = vector.load %arg3[%c0, %7, %c0_1] : memref<1x256x128xbf16, #tpu.memory_space<vmem>>, vector<1x128x128xbf16>
    %9 = vector.shape_cast %8 : vector<1x128x128xbf16> to vector<128x128xbf16>
    %c0_2 = arith.constant 0 : index
    %c0_3 = arith.constant 0 : index
    %10 = vector.load %arg4[%c0_2, %c0_3] : memref<128x128xbf16, #tpu.memory_space<vmem>>, vector<128x128xbf16>
    %cst = arith.constant dense<0.000000e+00> : vector<128x128xf32>
    %11 = tpu.matmul %9, %10, %cst {dimension_numbers = #tpu.dot_dimension_numbers<[1], [0], [0], [1], [0, 0, 1, 1], [], []>} : vector<128x128xbf16>, vector<128x128xbf16>, vector<128x128xf32> -> vector<128x128xf32>
    %c0_4 = arith.constant 0 : index
    %c0_5 = arith.constant 0 : index
    %12 = vector.load %arg5[%c0_4, %c0_5] : memref<1x128xf32, #tpu.memory_space<vmem>>, vector<1x128xf32>
    %13 = vector.broadcast %12 : vector<1x128xf32> to vector<128x128xf32>
    %14 = arith.addf %11, %13 : vector<128x128xf32>
    %15 = arith.truncf %14 : vector<128x128xf32> to vector<128x128xbf16>
    %c0_6 = arith.constant 0 : index
    %c0_7 = arith.constant 0 : index
    %16 = vector.load %arg11[%c0_6, %c0_7] : memref<64x128xbf16, #tpu.memory_space<vmem>>, vector<64x128xbf16>
    %cst_8 = arith.constant dense<0.000000e+00> : vector<128x64xf32>
    %17 = tpu.matmul %15, %16, %cst_8 {dimension_numbers = #tpu.dot_dimension_numbers<[1], [1], [0], [0], [0, 0, 1, 0], [], []>} : vector<128x128xbf16>, vector<64x128xbf16>, vector<128x64xf32> -> vector<128x64xf32>
    %cst_9 = arith.constant dense<0xFF800000> : vector<128xf32>
    %18 = vector.multi_reduction <maximumf>, %17, %cst_9 [1] : vector<128x64xf32> to vector<128xf32>
    %19 = vector.shape_cast %18 : vector<128xf32> to vector<128x1xf32>
    %20 = vector.broadcast %19 : vector<128x1xf32> to vector<128x64xf32>
    %21 = arith.subf %17, %20 : vector<128x64xf32>
    %22 = arith.truncf %21 : vector<128x64xf32> to vector<128x64xbf16>
    %23 = math.exp %22 : vector<128x64xbf16>
    %c0_10 = arith.constant 0 : index
    %c0_11 = arith.constant 0 : index
    %24 = vector.load %arg12[%c0_10, %c0_11] : memref<64x128xbf16, #tpu.memory_space<vmem>>, vector<64x128xbf16>
    %cst_12 = arith.constant dense<0.000000e+00> : vector<128x128xf32>
    %25 = tpu.matmul %23, %24, %cst_12 {dimension_numbers = #tpu.dot_dimension_numbers<[1], [0], [0], [1], [0, 0, 1, 1], [], []>} : vector<128x64xbf16>, vector<64x128xbf16>, vector<128x128xf32> -> vector<128x128xf32>
    %26 = vector.extract_strided_slice %25 {offsets = [0, 2], sizes = [128, 1], strides = [1, 1]} : vector<128x128xf32> to vector<128x1xf32>
    %27 = tpu.reciprocal %26 {approx = true} : vector<128x1xf32> -> vector<128x1xf32>
    %28 = vector.broadcast %27 : vector<128x1xf32> to vector<128x128xf32>
    %29 = arith.mulf %25, %28 : vector<128x128xf32>
    %30 = arith.truncf %29 : vector<128x128xf32> to vector<128x128xbf16>
    %c0_13 = arith.constant 0 : index
    %c0_14 = arith.constant 0 : index
    %31 = vector.load %arg8[%c0_13, %c0_14] : memref<128x128xbf16, #tpu.memory_space<vmem>>, vector<128x128xbf16>
    %cst_15 = arith.constant dense<0.000000e+00> : vector<128x128xf32>
    %32 = tpu.matmul %30, %31, %cst_15 {dimension_numbers = #tpu.dot_dimension_numbers<[1], [0], [0], [1], [0, 0, 1, 1], [], []>} : vector<128x128xbf16>, vector<128x128xbf16>, vector<128x128xf32> -> vector<128x128xf32>
    %c0_16 = arith.constant 0 : index
    %c0_17 = arith.constant 0 : index
    %33 = vector.load %arg9[%c0_16, %c0_17] : memref<1x128xf32, #tpu.memory_space<vmem>>, vector<1x128xf32>
    %34 = vector.broadcast %33 : vector<1x128xf32> to vector<128x128xf32>
    %35 = arith.addf %32, %34 : vector<128x128xf32>
    %36 = arith.truncf %35 : vector<128x128xf32> to vector<128x128xbf16>
    %c0_18 = arith.constant 0 : index
    %c0_19 = arith.constant 0 : index
    %c0_20 = arith.constant 0 : index
    %37 = vector.load %arg10[%c0_18, %c0_19, %c0_20] : memref<1x128x128xbf16, #tpu.memory_space<vmem>>, vector<1x128x128xbf16>
    %38 = vector.shape_cast %37 : vector<1x128x128xbf16> to vector<128x128xbf16>
    %39 = vector.shape_cast %36 : vector<128x128xbf16> to vector<1x128x128xbf16>
    tpu.vector_store %arg10[%c0_18, %c0_19, %c0_20], %39 {strides = array<i32>} : memref<1x128x128xbf16, #tpu.memory_space<vmem>>, vector<1x128x128xbf16>,
    return
  }
  func.func @transform_0(%arg0: i32, %arg1: i32, %arg2: i32) -> (i32, i32, i32) {
    %c0_i32 = arith.constant 0 : i32
    %c0_i32_0 = arith.constant 0 : i32
    %c0_i32_1 = arith.constant 0 : i32
    return %arg1, %c0_i32, %c0_i32_0 : i32, i32, i32
  }
  func.func @transform_1(%arg0: i32, %arg1: i32, %arg2: i32) -> (i32, i32) {
    %c0_i32 = arith.constant 0 : i32
    %c0_i32_0 = arith.constant 0 : i32
    %c0_i32_1 = arith.constant 0 : i32
    return %c0_i32, %c0_i32_0 : i32, i32
  }
  func.func @transform_2(%arg0: i32, %arg1: i32, %arg2: i32) -> (i32, i32) {
    %c0_i32 = arith.constant 0 : i32
    %c0_i32_0 = arith.constant 0 : i32
    %c0_i32_1 = arith.constant 0 : i32
    return %c0_i32, %c0_i32_0 : i32, i32
  }
  func.func @transform_3(%arg0: i32, %arg1: i32, %arg2: i32) -> (i32, i32) {
    %c0_i32 = arith.constant 0 : i32
    %c0_i32_0 = arith.constant 0 : i32
    %c0_i32_1 = arith.constant 0 : i32
    return %c0_i32, %c0_i32_0 : i32, i32
  }
  func.func @transform_4(%arg0: i32, %arg1: i32, %arg2: i32) -> (i32, i32) {
    %c0_i32 = arith.constant 0 : i32
    %c0_i32_0 = arith.constant 0 : i32
    %c0_i32_1 = arith.constant 0 : i32
    return %c0_i32, %c0_i32_0 : i32, i32
  }
  func.func @transform_5(%arg0: i32, %arg1: i32, %arg2: i32) -> (i32, i32) {
    %c0_i32 = arith.constant 0 : i32
    %c0_i32_0 = arith.constant 0 : i32
    %c0_i32_1 = arith.constant 0 : i32
    return %c0_i32, %c0_i32_0 : i32, i32
  }
  func.func @transform_6(%arg0: i32, %arg1: i32, %arg2: i32) -> (i32, i32) {
    %c0_i32 = arith.constant 0 : i32
    %c0_i32_0 = arith.constant 0 : i32
    %c0_i32_1 = arith.constant 0 : i32
    return %c0_i32, %c0_i32_0 : i32, i32
  }
  func.func @transform_7(%arg0: i32, %arg1: i32, %arg2: i32) -> (i32, i32, i32) {
    %c2_i32 = arith.constant 2 : i32
    %0 = arith.muli %arg0, %c2_i32 : i32
    %1 = arith.addi %0, %arg2 : i32
    %c0_i32 = arith.constant 0 : i32
    %c0_i32_0 = arith.constant 0 : i32
    return %arg1, %1, %c0_i32 : i32, i32, i32
  }
}

</mosaic_0001>

<bundles_post_ra>
// kernel: tpu_custom_call.1
= control target key start
LH: loop header
LB: loop body
LE: loop exit
PB: predicated region body
PF: predicated region fallthrough
CT: control target
= control target key end

     0   :  { %s3398_s0 = inlined_call_operand.hbm [shape: bf16[2,256,128], index: 0, kind: input, shape index: {}]   ;;  %s3399_s1 = inlined_call_operand.hbm [shape: bf16[128,128], index: 1, kind: input, shape index: {}]   ;;  %s3400_s2 = inlined_call_operand.vmem [shape: f32[1,128], index: 2, kind: input, shape index: {}]   ;;  %s3401_s3 = inlined_call_operand.hbm [shape: bf16[128,256], index: 3, kind: input, shape index: {}]   ;;  %s3402_s4 = inlined_call_operand.vmem [shape: f32[1,256], index: 4, kind: input, shape index: {}]   ;;  %s3403_s5 = inlined_call_operand.hbm [shape: bf16[128,128], index: 5, kind: input, shape index: {}]   ;;  %s3404_s6 = inlined_call_operand.vmem [shape: f32[1,128], index: 6, kind: input, shape index: {}]   ;;  %s3405_s7 = inlined_call_operand.hbm [shape: bf16[2,256,128], index: 7, kind: output, shape index: {}]  }
   0x1   :  { %3416 = sst [smem:[#allocation24_spill]] %s3399_s1 }
   0x2   :  { %3417 = sst [smem:[#allocation25_spill]] %s3401_s3 }
   0x3   :  { %3418 = sst [smem:[#allocation26_spill]] %s3403_s5 }
   0x4   :  { %3419 = sst [smem:[#allocation27_spill]] %s3404_s6 }
   0x5   :  { %3420 = sst [smem:[#allocation28_spill]] %s3405_s7 }
   0x6   :  { %12 = vsyncpa [#allocation5], 0 }
   0x7   :  { %14 = vsyncpa [#allocation5 + $0x1], 0 }
   0x8   :  { %15 = vsyncpa [#allocation8], 0 }
   0x9   :  { %16 = vsyncpa [#allocation11], 0 }
   0xa   :  { %17 = vsyncpa [#allocation6], 0 }
   0xb   :  { %19 = vsyncpa [#allocation6 + $0x1], 0  ;;  %s2821_s24 = smov 0   ;;  %s2823_s25 = smov 0  }
   0xc   :  { %s2825_s26 = smov 0   ;;  %s2827_s27 = smov 0  }
   0xd   :  { %s2829_s28 = smov 0   ;;  %s2831_s29 = smov 0  }
   0xe   :  { %s2833_s30 = smov 0   ;;  %s2835_s8 = smov 0  }
   0xf   :  { %s2837_s9 = smov 0   ;;  %s2839_s10 = smov 0  }
  0x10   :  { %s2841_s11 = smov 0  }
  0x11 LB: > { %3421 = sst [smem:[#allocation17_spill]] %s2729_s24  ;;  %s1863_s12 = sadd.s32 4294967295, %s2769_s11   ;;  %s2769_s11 = sphi %s2841_s11, %s25_s11   ;;  %s2765_s10 = sphi %s2839_s10, %s3456_s10   ;;  %s2761_s9 = sphi %s2837_s9, %s3447_s9   ;;  %s2757_s8 = sphi %s2835_s8, %s3455_s8   ;;  %s2753_s30 = sphi %s2833_s30, %s3446_s30   ;;  %s2749_s29 = sphi %s2831_s29, %s3454_s29   ;;  %s2745_s28 = sphi %s2829_s28, %s3453_s28   ;;  %s2741_s27 = sphi %s2827_s27, %s3452_s27   ;;  %s2737_s26 = sphi %s2825_s26, %s3451_s26   ;;  %s2733_s25 = sphi %s2823_s25, %s3450_s25   ;;  %s2729_s24 = sphi %s2821_s24, %s3449_s24  }
  0x12   : > { %3422 = sst [smem:[#allocation18_spill]] %s2757_s8  ;;  %s1864_s13 = sadd.s32 4294967294, %s2769_s11  }
  0x13   : > { %3423 = sst [smem:[#allocation19_spill]] %s2761_s9  ;;  %p64_p0 = scmp.ne.s32.totalorder %s2745_s28, %s2741_s27 }
  0x14   : > { %p2877_p1 = scmp.eq.s32.totalorder %s1863_s12, 0  ;;  %p219_p2 = scmp.ne.s32.totalorder %s2737_s26, %s2733_s25 }
  0x15   : > { %p220_p3 = scmp.eq.s32.totalorder %s1863_s12, 3  ;;  %p225_p5 = scmp.ne.s32.totalorder %s2733_s25, %s2729_s24 }
  0x16   : > { %p2885_p4 = por %p2877_p1, %p64_p0  ;;  %p226_p7 = scmp.eq.s32.totalorder %s1864_s13, 3 }
  0x17   : > { %p2891_p6 = por %p220_p3, %p219_p2  ;;  %p1865_p8 = scmp.ge.s32.totalorder %s2769_s11, 1 }
  0x18   : > { %p233_p9 = scmp.lt.s32.totalorder %s2769_s11, 5  ;;  %p2897_p10 = por %p226_p7, %p225_p5 }
  0x19   : > { %s3426_s16 = scalar_select %p2891_p6, 1, 0 }
  0x1a   : > { %s3428_s17 = scalar_select %p2897_p10, 1, 0 }
  0x1b   : > { %3427 = sst [smem:[#allocation20_spill]] %s3426_s16  ;;  %p2901_p11 = pnand %p1865_p8, %p233_p9 }
  0x1c   : > { %3429 = sst [smem:[#allocation21_spill]] %s3428_s17  ;;  %s2771_s22 = smov [#allocation7]  }
  0x1d   : > { %s3431_s1 = sld [smem:[#allocation24_spill]]  ;;  %p2326_p12 = pneg %p2901_p11 }
  0x1e   : > { %s246_s23 = sshll.u32 %s2771_s22, 4  ;;  %s3433_s3 = sld [smem:[#allocation25_spill]]  ;;  %s247_s23 = int_to_ptr.vmem [resolvable:$true] %s246_s23 }
  0x1f   : > { %p2912_p13 = pnand %p2326_p12, %p2877_p1  ;;  %s3410_s19 = smov 64  }
  0x20   : > { %s3411_s20 = smov 4   ;;  %s2774_s22 = smov [#allocation9]  }
  0x21   : > { %s3434_s5 = sld [smem:[#allocation26_spill]]  ;;  %s2775_s24 = smov 128  }
  0x22   : > { %s2776_s16 = smov 8   ;;  %s40_s12 = sadd.s32 1, %s2765_s10 }
  0x23   : > { %s244_s21 = sshll.u32 %s3431_s1, 4  ;;  %s263_s1 = sshll.u32 %s2774_s22, 4  ;;  %s245_s21 = int_to_ptr.hbm [resolvable:$true] %s244_s21  ;;  %s264_s1 = int_to_ptr.vmem [resolvable:$true] %s263_s1 }
  0x24   : > { %s261_s17 = sshll.u32 %s3433_s3, 4  ;;  %s37_s22 = sadd.s32 1, %s2761_s9  ;;  %s262_s17 = int_to_ptr.hbm [resolvable:$true] %s261_s17 }
  0x25   : > { %2329 = dma.hbm_to_vmem [thread:$0]  (!%p2912_p13), %s245_s21, 1024, %s247_s23, [#allocation8], %s3410_s19, %s3410_s19, %s3411_s20  }
  0x26   : > { %2332 = dma.hbm_to_vmem [thread:$0]  (!%p2912_p13), %s262_s17, 2048, %s264_s1, [#allocation8], %s2775_s24, %s2775_s24, %s2776_s16  }
  0x27   : > { %s278_s3 = sshll.u32 %s3434_s5, 4  ;;  %s2777_s21 = smov [#allocation10]   ;;  %s279_s3 = int_to_ptr.hbm [resolvable:$true] %s278_s3 }
  0x28   : > { %s280_s23 = sshll.u32 %s2777_s21, 4  ;;  %p38_p0 = scmp.ge.s32.totalorder %s37_s22, 2  ;;  %s281_s23 = int_to_ptr.vmem [resolvable:$true] %s280_s23 }
  0x29   : > { %2335 = dma.hbm_to_vmem [thread:$0]  (!%p2912_p13), %s279_s3, 1024, %s281_s23, [#allocation11], %s3410_s19, %s3410_s19, %s3411_s20  }
  0x2a   : > { %s51_s13 = sadd.s32 1, %s2749_s29  ;;  %p58_p2 = scmp.ne.s32.totalorder %s2749_s29, %s2745_s28 }
  0x2b   : > { %p59_p3 = scmp.eq.s32.totalorder %s2769_s11, 0  ;;  %s3458_s22 = smov (%p38_p0, %s37_s22), 0 }
  0x2c   : > { %3435 = sst [smem:[#allocation22_spill]] %s3458_s22  ;;  %s3460_s12 = smov (!%p38_p0, %s40_s12), %s2765_s10 }
  0x2d   : > { %p2943_p5 = por %p59_p3, %p58_p2  ;;  %s205_s24 = ssub.s32 %s2761_s9, %s3458_s22 }
  0x2e   : > { %p42_p7 = scmp.ge.s32.totalorder %s3460_s12, 2  ;;  %s209_s3 = sadd.s32 1, %s2737_s26 }
  0x2f   : > { %p2347_p8 = scmp.lt.s32.totalorder %s2769_s11, 4  ;;  %s297_s16 = sand.u32 1, %s2749_s29  }
  0x30   : > { %s3462_s12 = smov (%p42_p7, %s3460_s12), 0  ;;  %s1870_s17 = sshll.u32 %s297_s16, 7 }
  0x31   : > { %3437 = sst [smem:[#allocation23_spill]] %s3462_s12  ;;  %s48_s27 = ssub.s32 %s2765_s10, %s3462_s12 }
  0x32   : > { %p49_p9 = scmp.eq.s32.totalorder %s48_s27, 0  ;;  %s206_s21 = sor.u32 %s205_s24, %s48_s27 }
  0x33   : > { %p207_p12 = scmp.eq.s32.totalorder %s206_s21, 0  ;;  %s2152_s23 = sshll.u32 %s2765_s10, 7 }
  0x34   : > { %s2958_s19 = scalar_select %p49_p9, %s2749_s29, %s51_s13  }
  0x35   : > { %s2961_s20 = scalar_select %p207_p12, %s2737_s26, %s209_s3  }
  0x36   : > { %s306_s9 = scalar_lea.hbm %s3398_s0, %s2152_s23  ;;  %s301_s7 = scalar_lea.vmem [#allocation4], %s1870_s17 }
  0x37   : > { %s309_s8 = sshll.u32 %s301_s7, 4  ;;  %s307_s6 = sshll.u32 %s306_s9, 4  ;;  %s310_s8 = int_to_ptr.vmem [resolvable:$true] %s309_s8  ;;  %s308_s6 = int_to_ptr.hbm [resolvable:$true] %s307_s6 }
  0x38   : > { %p2337_p13 = pnand %p2347_p8, %p2943_p5  ;;  %s298_s12 = scalar_lea.sflag [#allocation5], %s297_s16 }
  0x39   : > { %s3438_s24 = smov 4   ;;  %s3439_s27 = smov 64  }
  0x3a   : > { %2339 = dma.hbm_to_vmem [thread:$0]  (!%p2337_p13), %s308_s6, 2048, %s310_s8, %s298_s12, %s3439_s27, %s3439_s27, %s3438_s24  }
  0x3b   : > { %321 = sbr.rel (%p2901_p11) target bundleno = 1339 (0x53b), region = 48  ;;  %s323_s5 = sand.u32 (!%p2901_p11), 1, %s2745_s28  }
  0x3c   : > { %s1874_s22 = sshll.u32 (!%p2901_p11), %s323_s5, 7  ;;  %s324_s13 = scalar_lea.sflag (!%p2901_p11), [#allocation5], %s323_s5 }
  0x3d   : > { %s2976_s7 = scalar_lea.vmem (!%p2901_p11), [#allocation4], %s1874_s22 }
  0x40   : > { %2712 = dma.done.wait (%p2885_p4), %s324_s13, 2048  }
  0x41   : > { %2714 = vsyncadd (%p2885_p4), %s324_s13, 4294965248 }
  0x42   : > { %2716 = dma.done.wait (%p2877_p1), [#allocation8], 3072  }
  0x43   : > { %2718 = vsyncadd (%p2877_p1), [#allocation8], 4294964224 }
  0x44   : > { %2720 = dma.done.wait (%p2877_p1), [#allocation11], 1024  }
  0x45   : > { %2722 = vsyncadd (%p2877_p1), [#allocation11], 4294966272  ;;  %s371_s6 = sand.u32 1, %s2733_s25   ;;  %p1879_p4 = scmp.ne.s32.totalorder %s2753_s30, 0 }
  0x46   : > { %s1878_s8 = sshll.u32 %s371_s6, 6 }
  0x47   : > { %s2993_s9 = scalar_lea.vmem [#allocation12], %s1878_s8  ;;  %381 = sbr.rel (%p1879_p4) target bundleno = 374 (0x176), region = 68 }
  0x4c   : > { %v1954_v0 = vld [vmem:[#allocation9 + $0x70] sm:$0xf]  ;;  %v2172_v1 = vld [vmem:[#allocation9 + $0x74] sm:$0xf0]  ;;  %v2171_v2 = vld [vmem:[#allocation9 + $0x74] sm:$0xf] }
  0x4d   : > { %v2996_v3 = vor.u32 %v2172_v1, %v1954_v0  ;;  %v1956_v4 = vld [vmem:[#allocation9 + $0x78] sm:$0xf0]  ;;  %v1946_v5 = vld [vmem:[#allocation9 + $0x60] sm:$0xf]  ;;  %v2170_v6 = vld [vmem:[#allocation9 + $0x64] sm:$0xf0] }
  0x4e   : > { %v2998_v7 = vor.u32 %v2171_v2, %v1956_v4  ;;  %v2169_v8 = vld [vmem:[#allocation9 + $0x64] sm:$0xf]  ;;  %v1948_v9 = vld [vmem:[#allocation9 + $0x68] sm:$0xf0]  ;;  %v3002_v10 = vor.u32 %v2170_v6, %v1946_v5  ;;  %v1938_v12 = vld [vmem:[#allocation9 + $0x50] sm:$0xf] }
  0x4f   : > { %510 = vmatpush.bf16.msra.mxu0 %v2996_v3  ;;  %600 = vmatpush.bf16.msra.mxu2 %v2996_v3  ;;  %v3006_v11 = vor.u32 %v2169_v8, %v1948_v9  ;;  %v2168_v13 = vld [vmem:[#allocation9 + $0x54] sm:$0xf0]  ;;  %v2167_v14 = vld [vmem:[#allocation9 + $0x54] sm:$0xf]  ;;  %v1940_v15 = vld [vmem:[#allocation9 + $0x58] sm:$0xf0] }
  0x50   : > { %539 = vmatpush.bf16.msra.mxu1 %v2998_v7  ;;  %629 = vmatpush.bf16.msra.mxu3 %v2998_v7  ;;  %v3010_v16 = vor.u32 %v2168_v13, %v1938_v12  ;;  %v3014_v17 = vor.u32 %v2167_v14, %v1940_v15  ;;  %v1930_v18 = vld [vmem:[#allocation9 + $0x40] sm:$0xf]  ;;  %v2166_v19 = vld [vmem:[#allocation9 + $0x44] sm:$0xf0]  ;;  %v2165_v20 = vld [vmem:[#allocation9 + $0x44] sm:$0xf] }
  0x51   : > { %v1932_v21 = vld [vmem:[#allocation9 + $0x48] sm:$0xf0]  ;;  %v3018_v22 = vor.u32 %v2166_v19, %v1930_v18  ;;  %v1922_v24 = vld [vmem:[#allocation9 + $0x30] sm:$0xf]  ;;  %v2164_v25 = vld [vmem:[#allocation9 + $0x34] sm:$0xf0] }
  0x52   : > { %v3022_v23 = vor.u32 %v2165_v20, %v1932_v21  ;;  %v2163_v26 = vld [vmem:[#allocation9 + $0x34] sm:$0xf]  ;;  %v1924_v27 = vld [vmem:[#allocation9 + $0x38] sm:$0xf0]  ;;  %v3026_v28 = vor.u32 %v2164_v25, %v1922_v24  ;;  %v1914_v30 = vld [vmem:[#allocation9 + $0x20] sm:$0xf] }
  0x53   : > { %511 = vmatpush.bf16.msra.mxu0 %v3002_v10  ;;  %601 = vmatpush.bf16.msra.mxu2 %v3002_v10  ;;  %v3030_v29 = vor.u32 %v2163_v26, %v1924_v27  ;;  %v2162_v31 = vld [vmem:[#allocation9 + $0x24] sm:$0xf0]  ;;  %v2161_v32 = vld [vmem:[#allocation9 + $0x24] sm:$0xf]  ;;  %v1916_v33 = vld [vmem:[#allocation9 + $0x28] sm:$0xf0] }
  0x54   : > { %540 = vmatpush.bf16.msra.mxu1 %v3006_v11  ;;  %630 = vmatpush.bf16.msra.mxu3 %v3006_v11  ;;  %v1915_v34 = vor.u32 %v2162_v31, %v1914_v30  ;;  %v1919_v35 = vor.u32 %v2161_v32, %v1916_v33  ;;  %v1906_v36 = vld [vmem:[#allocation9 + $0x10] sm:$0xf]  ;;  %v2160_v37 = vld [vmem:[#allocation9 + $0x14] sm:$0xf0]  ;;  %v2159_v38 = vld [vmem:[#allocation9 + $0x14] sm:$0xf] }
  0x55   : > { %v1908_v39 = vld [vmem:[#allocation9 + $0x18] sm:$0xf0]  ;;  %v1907_v40 = vor.u32 %v2160_v37, %v1906_v36  ;;  %v1898_v42 = vld [vmem:[#allocation9] sm:$0xf]  ;;  %v2158_v43 = vld [vmem:[#allocation9 + $0x4] sm:$0xf0] }
  0x56   : > { %v1911_v41 = vor.u32 %v2159_v38, %v1908_v39  ;;  %v2157_v44 = vld [vmem:[#allocation9 + $0x4] sm:$0xf]  ;;  %v1900_v45 = vld [vmem:[#allocation9 + $0x8] sm:$0xf0]  ;;  %v1899_v46 = vor.u32 %v2158_v43, %v1898_v42  ;;  %v2155_v52 = vld [vmem:[%s2976_s7 + $0x10] sm:$0xff] }
  0x57   : > { %512 = vmatpush.bf16.msra.mxu0 %v3010_v16  ;;  %602 = vmatpush.bf16.msra.mxu2 %v3010_v16  ;;  %v1903_v47 = vor.u32 %v2157_v44, %v1900_v45  ;;  %v2153_v48 = vld [vmem:[%s2976_s7] sm:$0xff]  ;;  %v2154_v50 = vld [vmem:[%s2976_s7 + $0x8] sm:$0xff]  ;;  %v2175_v53 = vld [vmem:[%s2976_s7 + $0x30] sm:$0xff] }
  0x58   : > { %541 = vmatpush.bf16.msra.mxu1 %v3014_v17  ;;  %631 = vmatpush.bf16.msra.mxu3 %v3014_v17  ;;  %v2173_v49 = vld [vmem:[%s2976_s7 + $0x20] sm:$0xff]  ;;  %v2174_v51 = vld [vmem:[%s2976_s7 + $0x28] sm:$0xff]  ;;  %v2156_v54 = vld [vmem:[%s2976_s7 + $0x18] sm:$0xff] }
  0x59   : > { %v2176_v55 = vld [vmem:[%s2976_s7 + $0x38] sm:$0xff]  ;;  %v2177_v56 = vld [vmem:[%s2976_s7 + $0x40] sm:$0xff]  ;;  %v2178_v58 = vld [vmem:[%s2976_s7 + $0x48] sm:$0xff] }
  0x5a   : > { %v2181_v57 = vld [vmem:[%s2976_s7 + $0x60] sm:$0xff]  ;;  %v2182_v59 = vld [vmem:[%s2976_s7 + $0x68] sm:$0xff]  ;;  %v2179_v60 = vld [vmem:[%s2976_s7 + $0x50] sm:$0xff] }
  0x5b   : > { %513 = vmatpush.bf16.msra.mxu0 %v3018_v22  ;;  %603 = vmatpush.bf16.msra.mxu2 %v3018_v22  ;;  %v2183_v61 = vld [vmem:[%s2976_s7 + $0x70] sm:$0xff]  ;;  %v2180_v62 = vld [vmem:[%s2976_s7 + $0x58] sm:$0xff] }
  0x5c   : > { %542 = vmatpush.bf16.msra.mxu1 %v3022_v23  ;;  %632 = vmatpush.bf16.msra.mxu3 %v3022_v23  ;;  %v2184_v63 = vld [vmem:[%s2976_s7 + $0x78] sm:$0xff] }
  0x5f   : > { %514 = vmatpush.bf16.msra.mxu0 %v3026_v28  ;;  %604 = vmatpush.bf16.msra.mxu2 %v3026_v28 }
  0x60   : > { %543 = vmatpush.bf16.msra.mxu1 %v3030_v29  ;;  %633 = vmatpush.bf16.msra.mxu3 %v3030_v29 }
  0x63   : > { %515 = vmatpush.bf16.msra.mxu0 %v1915_v34  ;;  %605 = vmatpush.bf16.msra.mxu2 %v1915_v34 }
  0x64   : > { %544 = vmatpush.bf16.msra.mxu1 %v1919_v35  ;;  %634 = vmatpush.bf16.msra.mxu3 %v1919_v35 }
  0x67   : > { %516 = vmatpush.bf16.msra.mxu0 %v1907_v40  ;;  %606 = vmatpush.bf16.msra.mxu2 %v1907_v40 }
  0x68   : > { %545 = vmatpush.bf16.msra.mxu1 %v1911_v41  ;;  %635 = vmatpush.bf16.msra.mxu3 %v1911_v41 }
  0x6b   : > { %517 = vmatpush.bf16.msra.mxu0 %v1899_v46  ;;  %607 = vmatpush.bf16.msra.mxu2 %v1899_v46 }
  0x6c   : > { %546 = vmatpush.bf16.msra.mxu1 %v1903_v47  ;;  %636 = vmatpush.bf16.msra.mxu3 %v1903_v47 }
  0x6e   : > { %518 = vmatmul.bf16.vlgmr.msra.gmra.mxu0 %v2153_v48  ;;  %608 = vmatmul.bf16.vlgmr.msra.gmra.mxu2 %v2173_v49 }
  0x6f   : > { %796 = vmatpush.bf16.msrb.mxu2 %v2996_v3  ;;  %547 = vmatmul.bf16.vlgmr.msra.gmra.mxu1 %v2153_v48 }
  0x70   : > { %825 = vmatpush.bf16.msrb.mxu3 %v2998_v7  ;;  %706 = vmatpush.bf16.msrb.mxu0 %v2996_v3 }
  0x71   : > { %637 = vmatmul.bf16.vlgmr.msra.gmra.mxu3 %v2173_v49  ;;  %735 = vmatpush.bf16.msrb.mxu1 %v2998_v7 }
  0x73   : > { %797 = vmatpush.bf16.msrb.mxu2 %v3002_v10 }
  0x74   : > { %826 = vmatpush.bf16.msrb.mxu3 %v3006_v11  ;;  %707 = vmatpush.bf16.msrb.mxu0 %v3002_v10 }
  0x75   : > { %736 = vmatpush.bf16.msrb.mxu1 %v3006_v11 }
  0x77   : > { %798 = vmatpush.bf16.msrb.mxu2 %v3010_v16 }
  0x78   : > { %827 = vmatpush.bf16.msrb.mxu3 %v3014_v17  ;;  %708 = vmatpush.bf16.msrb.mxu0 %v3010_v16 }
  0x79   : > { %737 = vmatpush.bf16.msrb.mxu1 %v3014_v17 }
  0x7b   : > { %799 = vmatpush.bf16.msrb.mxu2 %v3018_v22 }
  0x7c   : > { %828 = vmatpush.bf16.msrb.mxu3 %v3022_v23  ;;  %709 = vmatpush.bf16.msrb.mxu0 %v3018_v22 }
  0x7d   : > { %738 = vmatpush.bf16.msrb.mxu1 %v3022_v23 }
  0x7e   : > { %523 = vmatmul.bf16.gmra.mxu0 %v2154_v50  ;;  %613 = vmatmul.bf16.gmra.mxu2 %v2174_v51 }
  0x7f   : > { %800 = vmatpush.bf16.msrb.mxu2 %v3026_v28  ;;  %552 = vmatmul.bf16.gmra.mxu1 %v2154_v50 }
  0x80   : > { %829 = vmatpush.bf16.msrb.mxu3 %v3030_v29  ;;  %710 = vmatpush.bf16.msrb.mxu0 %v3026_v28 }
  0x81   : > { %642 = vmatmul.bf16.gmra.mxu3 %v2174_v51  ;;  %739 = vmatpush.bf16.msrb.mxu1 %v3030_v29 }
  0x83   : > { %801 = vmatpush.bf16.msrb.mxu2 %v1915_v34 }
  0x84   : > { %830 = vmatpush.bf16.msrb.mxu3 %v1919_v35  ;;  %711 = vmatpush.bf16.msrb.mxu0 %v1915_v34 }
  0x85   : > { %740 = vmatpush.bf16.msrb.mxu1 %v1919_v35 }
  0x87   : > { %802 = vmatpush.bf16.msrb.mxu2 %v1907_v40 }
  0x88   : > { %831 = vmatpush.bf16.msrb.mxu3 %v1911_v41  ;;  %712 = vmatpush.bf16.msrb.mxu0 %v1907_v40 }
  0x89   : > { %741 = vmatpush.bf16.msrb.mxu1 %v1911_v41 }
  0x8b   : > { %803 = vmatpush.bf16.msrb.mxu2 %v1899_v46 }
  0x8c   : > { %832 = vmatpush.bf16.msrb.mxu3 %v1903_v47  ;;  %713 = vmatpush.bf16.msrb.mxu0 %v1899_v46 }
  0x8d   : > { %742 = vmatpush.bf16.msrb.mxu1 %v1903_v47 }
  0x8e   : > { %528 = vmatmul.bf16.gmra.mxu0 %v2155_v52  ;;  %618 = vmatmul.bf16.gmra.mxu2 %v2175_v53 }
  0x8f   : > { %557 = vmatmul.bf16.gmra.mxu1 %v2155_v52 }
  0x91   : > { %647 = vmatmul.bf16.gmra.mxu3 %v2175_v53 }
  0x9e   : > { %533 = vmatmul.bf16.gmra.mxu0 %v2156_v54  ;;  %623 = vmatmul.bf16.gmra.mxu2 %v2176_v55 }
  0x9f   : > { %562 = vmatmul.bf16.gmra.mxu1 %v2156_v54 }
  0xa1   : > { %652 = vmatmul.bf16.gmra.mxu3 %v2176_v55  ;;  %v886_v55 = vld [vmem:[%s3402_s4] sm:$0x3] }
  0xae   : > { %714 = vmatmul.bf16.vlgmr.msrb.gmra.mxu0 %v2177_v56  ;;  %804 = vmatmul.bf16.vlgmr.msrb.gmra.mxu2 %v2181_v57 }
  0xaf   : > { %743 = vmatmul.bf16.vlgmr.msrb.gmra.mxu1 %v2177_v56 }
  0xb1   : > { %833 = vmatmul.bf16.vlgmr.msrb.gmra.mxu3 %v2181_v57 }
  0xbe   : > { %719 = vmatmul.bf16.gmra.mxu0 %v2178_v58  ;;  %809 = vmatmul.bf16.gmra.mxu2 %v2182_v59 }
  0xbf   : > { %748 = vmatmul.bf16.gmra.mxu1 %v2178_v58 }
  0xc1   : > { %838 = vmatmul.bf16.gmra.mxu3 %v2182_v59  ;;  %v3147_v59 = vperm.slane %v886_v55, 0 }
  0xce   : > { %724 = vmatmul.bf16.gmra.mxu0 %v2179_v60  ;;  %814 = vmatmul.bf16.gmra.mxu2 %v2183_v61 }
  0xcf   : > { %753 = vmatmul.bf16.gmra.mxu1 %v2179_v60 }
  0xd1   : > { %843 = vmatmul.bf16.gmra.mxu3 %v2183_v61 }
  0xde   : > { %729 = vmatmul.bf16.gmra.mxu0 %v2180_v62  ;;  %819 = vmatmul.bf16.gmra.mxu2 %v2184_v63 }
  0xdf   : > { %758 = vmatmul.bf16.gmra.mxu1 %v2180_v62 }
  0xe1   : > { %848 = vmatmul.bf16.gmra.mxu3 %v2184_v63  ;;  %v3149_v63 = vperm.slane %v886_v55, 1 }
  0xeb   : > { %v519_v0 = vpop.f32.mrf.mxu0 }
  0xec   : > { %v548_v1 = vpop.f32.mrf.mxu1 }
  0xf1   : > { %v609_v2 = vpop.f32.mrf.mxu2 }
  0xf2   : > { %v658_v3 = vmax.f32 %v519_v0, %v609_v2 }
  0xf3   : > { %v521_v6 = vpop.f32.mrf.mxu0 }
  0xf4   : > { %v638_v4 = vpop.f32.mrf.mxu3  ;;  %v550_v7 = vpop.f32.mrf.mxu1 }
  0xf5   : > { %v659_v5 = vmax.f32 %v548_v1, %v638_v4 }
  0xf9   : > { %v611_v8 = vpop.f32.mrf.mxu2 }
  0xfa   : > { %v660_v9 = vmax.f32 %v521_v6, %v611_v8 }
  0xfb   : > { %v3072_v12 = vpop.f32.mrf.mxu0 }
  0xfc   : > { %v640_v10 = vpop.f32.mrf.mxu3  ;;  %v3074_v13 = vpop.f32.mrf.mxu1 }
  0xfd   : > { %v661_v11 = vmax.f32 %v550_v7, %v640_v10 }
 0x101   : > { %v3076_v14 = vpop.f32.mrf.mxu2 }
 0x102   : > { %v662_v15 = vmax.f32 %v3072_v12, %v3076_v14 }
 0x103   : > { %v3084_v18 = vpop.f32.mrf.mxu0 }
 0x104   : > { %v3080_v16 = vpop.f32.mrf.mxu3  ;;  %v3086_v19 = vpop.f32.mrf.mxu1 }
 0x105   : > { %v663_v17 = vmax.f32 %v3074_v13, %v3080_v16 }
 0x109   : > { %v3088_v20 = vpop.f32.mrf.mxu2 }
 0x10a   : > { %v664_v21 = vmax.f32 %v3084_v18, %v3088_v20 }
 0x10b   : > { %v3096_v24 = vpop.f32.mrf.mxu0 }
 0x10c   : > { %v3092_v22 = vpop.f32.mrf.mxu3  ;;  %v3098_v25 = vpop.f32.mrf.mxu1 }
 0x10d   : > { %v665_v23 = vmax.f32 %v3086_v19, %v3092_v22 }
 0x111   : > { %v3100_v26 = vpop.f32.mrf.mxu2 }
 0x112   : > { %v666_v27 = vmax.f32 %v3096_v24, %v3100_v26 }
 0x113   : > { %v3108_v30 = vpop.f32.mrf.mxu0 }
 0x114   : > { %v3104_v28 = vpop.f32.mrf.mxu3  ;;  %v3110_v31 = vpop.f32.mrf.mxu1 }
 0x115   : > { %v667_v29 = vmax.f32 %v3098_v25, %v3104_v28 }
 0x119   : > { %v3112_v32 = vpop.f32.mrf.mxu2 }
 0x11a   : > { %v668_v33 = vmax.f32 %v3108_v30, %v3112_v32 }
 0x11b   : > { %v3120_v36 = vpop.f32.mrf.mxu0 }
 0x11c   : > { %v3116_v34 = vpop.f32.mrf.mxu3  ;;  %v3122_v37 = vpop.f32.mrf.mxu1 }
 0x11d   : > { %v669_v35 = vmax.f32 %v3110_v31, %v3116_v34 }
 0x121   : > { %v3124_v38 = vpop.f32.mrf.mxu2 }
 0x122   : > { %v670_v39 = vmax.f32 %v3120_v36, %v3124_v38 }
 0x123   : > { %v3132_v42 = vpop.f32.mrf.mxu0 }
 0x124   : > { %v3128_v40 = vpop.f32.mrf.mxu3  ;;  %v3134_v43 = vpop.f32.mrf.mxu1 }
 0x125   : > { %v671_v41 = vmax.f32 %v3122_v37, %v3128_v40 }
 0x129   : > { %v3136_v44 = vpop.f32.mrf.mxu2 }
 0x12a   : > { %v672_v45 = vmax.f32 %v3132_v42, %v3136_v44 }
 0x12b   : > { %v715_v48 = vpop.f32.mrf.mxu0 }
 0x12c   : > { %v3140_v46 = vpop.f32.mrf.mxu3  ;;  %v744_v49 = vpop.f32.mrf.mxu1 }
 0x12d   : > { %v673_v47 = vmax.f32 %v3134_v43, %v3140_v46 }
 0x131   : > { %v805_v50 = vpop.f32.mrf.mxu2 }
 0x132   : > { %v854_v54 = vmax.f32 %v715_v48, %v805_v50 }
 0x133   : > { %v717_v52 = vpop.f32.mrf.mxu0 }
 0x134   : > { %v834_v51 = vpop.f32.mrf.mxu3  ;;  %v746_v53 = vpop.f32.mrf.mxu1  ;;  %v870_v58 = vmax.f32 %v658_v3, %v854_v54 }
 0x135   : > { %v855_v56 = vmax.f32 %v744_v49, %v834_v51 }
 0x136   : > { %v892_v7 = vadd.f32 %v3147_v59, %v870_v58 }
 0x137   : > { %v871_v62 = vmax.f32 %v659_v5, %v855_v56 }
 0x139   : > { %v807_v57 = vpop.f32.mrf.mxu2  ;;  %v893_v10 = vadd.f32 %v3149_v63, %v871_v62 }
 0x13a   : > { %v856_v60 = vmax.f32 %v717_v52, %v807_v57 }
 0x13b   : > { %v720_v1 = vpop.f32.mrf.mxu0 }
 0x13c   : > { %v836_v61 = vpop.f32.mrf.mxu3  ;;  %v872_v2 = vmax.f32 %v660_v9, %v856_v60  ;;  %v749_v4 = vpop.f32.mrf.mxu1 }
 0x13d   : > { %v857_v0 = vmax.f32 %v746_v53, %v836_v61 }
 0x13e   : > { %v894_v8 = vadd.f32 %v3147_v59, %v872_v2 }
 0x13f   : > { %v873_v6 = vmax.f32 %v661_v11, %v857_v0 }
 0x140   : > { %v2220_v48 = vpack.c.bf16 %v894_v8, %v892_v7 }
 0x141   : > { %v895_v3 = vadd.f32 %v3149_v63, %v873_v6  ;;  %v810_v50 = vpop.f32.mrf.mxu2 }
 0x142   : > { %2221 = vst [vmem:[#allocation2 + $0x10] sm:$0xff] %v2220_v48   ;;  %v858_v53 = vmax.f32 %v720_v1, %v810_v50 }
 0x143   : > { %v2240_v49 = vpack.c.bf16 %v895_v3, %v893_v10  ;;  %v722_v51 = vpop.f32.mrf.mxu0 }
 0x144   : > { %v839_v5 = vpop.f32.mrf.mxu3  ;;  %v751_v52 = vpop.f32.mrf.mxu1  ;;  %v874_v11 = vmax.f32 %v662_v15, %v858_v53 }
 0x145   : > { %2241 = vst [vmem:[#allocation3] sm:$0xff] %v2240_v49   ;;  %v859_v9 = vmax.f32 %v749_v4, %v839_v5 }
 0x146   : > { %v896_v12 = vadd.f32 %v3147_v59, %v874_v11 }
 0x147   : > { %v875_v57 = vmax.f32 %v663_v17, %v859_v9 }
 0x149   : > { %v812_v54 = vpop.f32.mrf.mxu2  ;;  %v897_v15 = vadd.f32 %v3149_v63, %v875_v57 }
 0x14a   : > { %v860_v55 = vmax.f32 %v722_v51, %v812_v54 }
 0x14b   : > { %v725_v60 = vpop.f32.mrf.mxu0 }
 0x14c   : > { %v841_v56 = vpop.f32.mrf.mxu3  ;;  %v876_v61 = vmax.f32 %v664_v21, %v860_v55  ;;  %v754_v62 = vpop.f32.mrf.mxu1 }
 0x14d   : > { %v861_v58 = vmax.f32 %v751_v52, %v841_v56 }
 0x14e   : > { %v898_v14 = vadd.f32 %v3147_v59, %v876_v61 }
 0x14f   : > { %v877_v0 = vmax.f32 %v665_v23, %v861_v58 }
 0x150   : > { %v2225_v16 = vpack.c.bf16 %v898_v14, %v896_v12 }
 0x151   : > { %v899_v13 = vadd.f32 %v3149_v63, %v877_v0  ;;  %v815_v1 = vpop.f32.mrf.mxu2 }
 0x152   : > { %2297 = vst [vmem:[#allocation2] sm:$0xff] %v2225_v16   ;;  %v862_v20 = vmax.f32 %v725_v60, %v815_v1 }
 0x153   : > { %v2245_v17 = vpack.c.bf16 %v899_v13, %v897_v15  ;;  %v727_v18 = vpop.f32.mrf.mxu0 }
 0x154   : > { %v844_v2 = vpop.f32.mrf.mxu3  ;;  %v756_v21 = vpop.f32.mrf.mxu1  ;;  %v878_v22 = vmax.f32 %v666_v27, %v862_v20 }
 0x155   : > { %2300 = vst [vmem:[#allocation3 + $0x18] sm:$0xff] %v2245_v17   ;;  %v863_v4 = vmax.f32 %v754_v62, %v844_v2 }
 0x156   : > { %v900_v48 = vadd.f32 %v3147_v59, %v878_v22 }
 0x157   : > { %v879_v7 = vmax.f32 %v667_v29, %v863_v4 }
 0x159   : > { %v817_v19 = vpop.f32.mrf.mxu2  ;;  %v901_v26 = vadd.f32 %v3149_v63, %v879_v7 }
 0x15a   : > { %v864_v23 = vmax.f32 %v727_v18, %v817_v19 }
 0x15b   : > { %v730_v49 = vpop.f32.mrf.mxu0 }
 0x15c   : > { %v846_v6 = vpop.f32.mrf.mxu3  ;;  %v880_v10 = vmax.f32 %v668_v33, %v864_v23  ;;  %v759_v28 = vpop.f32.mrf.mxu1 }
 0x15d   : > { %v865_v8 = vmax.f32 %v756_v21, %v846_v6 }
 0x15e   : > { %v902_v24 = vadd.f32 %v3147_v59, %v880_v10 }
 0x15f   : > { %v881_v3 = vmax.f32 %v669_v35, %v865_v8 }
 0x160   : > { %v2230_v25 = vpack.c.bf16 %v902_v24, %v900_v48 }
 0x161   : > { %v903_v27 = vadd.f32 %v3149_v63, %v881_v3  ;;  %v820_v50 = vpop.f32.mrf.mxu2 }
 0x162   : > { %2298 = vst [vmem:[#allocation2 + $0x18] sm:$0xff] %v2230_v25   ;;  %v866_v32 = vmax.f32 %v730_v49, %v820_v50 }
 0x163   : > { %v2250_v29 = vpack.c.bf16 %v903_v27, %v901_v26  ;;  %v732_v31 = vpop.f32.mrf.mxu0 }
 0x164   : > { %v849_v30 = vpop.f32.mrf.mxu3  ;;  %v882_v35 = vmax.f32 %v670_v39, %v866_v32  ;;  %v761_v5 = vpop.f32.mrf.mxu1 }
 0x165   : > { %2301 = vst [vmem:[#allocation3 + $0x8] sm:$0xff] %v2250_v29   ;;  %v867_v33 = vmax.f32 %v759_v28, %v849_v30 }
 0x166   : > { %v904_v55 = vadd.f32 %v3147_v59, %v882_v35 }
 0x167   : > { %v883_v53 = vmax.f32 %v671_v41, %v867_v33 }
 0x169   : > { %v822_v34 = vpop.f32.mrf.mxu2  ;;  %v905_v38 = vadd.f32 %v3149_v63, %v883_v53 }
 0x16a   : > { %v868_v51 = vmax.f32 %v732_v31, %v822_v34 }
 0x16c   : > { %v851_v52 = vpop.f32.mrf.mxu3  ;;  %v884_v54 = vmax.f32 %v672_v45, %v868_v51 }
 0x16d   : > { %v869_v9 = vmax.f32 %v761_v5, %v851_v52 }
 0x16e   : > { %v906_v36 = vadd.f32 %v3147_v59, %v884_v54 }
 0x16f   : > { %v885_v11 = vmax.f32 %v673_v47, %v869_v9 }
 0x170   : > { %v2235_v56 = vpack.c.bf16 %v906_v36, %v904_v55 }
 0x171   : > { %v907_v39 = vadd.f32 %v3149_v63, %v885_v11 }
 0x172   : > { %2299 = vst [vmem:[#allocation2 + $0x8] sm:$0xff] %v2235_v56  }
 0x173   : > { %v2255_v37 = vpack.c.bf16 %v907_v39, %v905_v38 }
 0x175   : > { %2302 = vst [vmem:[#allocation3 + $0x10] sm:$0xff] %v2255_v37  }
 0x176 PF: > { %v2200_v40 = vld [vmem:[#allocation7 + $0x38] sm:$0xff]  ;;  %v2199_v41 = vld [vmem:[#allocation7 + $0x30] sm:$0xff]  ;;  %v2198_v42 = vld [vmem:[#allocation7 + $0x28] sm:$0xff]  ;;  %s2008_s18 = sshll.u32 %s2753_s30, 7  ;;  %vm1217_vm0 = vcmask 523264   ;;  %s3440_s24 = sld [smem:[#allocation27_spill]] }
 0x177   : > { %1079 = vmatpush.bf16.msra.mxu0 %v2200_v40  ;;  %v2197_v43 = vld [vmem:[#allocation7 + $0x20] sm:$0xff]  ;;  %v2196_v44 = vld [vmem:[#allocation7 + $0x18] sm:$0xff]  ;;  %v2195_v45 = vld [vmem:[#allocation7 + $0x10] sm:$0xff]  ;;  %s943_s12 = sshra.s32 %s2008_s18, 3  ;;  %s3441_s27 = sld [smem:[#allocation18_spill]] }
 0x178   : > { %v2194_v46 = vld [vmem:[#allocation7 + $0x8] sm:$0xff]  ;;  %s2009_s1 = sshll.u32 %s943_s12, 2  ;;  %v2193_v47 = vld [vmem:[#allocation7] sm:$0xff]  ;;  %v2203_v0 = vld [vmem:[#allocation2 + $0x18] sm:$0xff]  ;;  %s2147_s5 = sshll.u32 %s2753_s30, 4 }
 0x179   : > { %s946_s3 = scalar_lea.vmem %s2976_s7, %s2009_s1 [#allocation4]  ;;  %v2204_v61 = vld [vmem:[#allocation2 + $0x8] sm:$0xff]  ;;  %v2202_v12 = vld [vmem:[#allocation2] sm:$0xff]  ;;  %v2201_v15 = vld [vmem:[#allocation2 + $0x10] sm:$0xff]  ;;  %s3442_s15 = sld [smem:[#allocation28_spill]] }
 0x17a   : > { %v2185_v59 = vld [vmem:[%s946_s3] sm:$0xff]  ;;  %v2186_v63 = vld [vmem:[%s946_s3 + $0x8] sm:$0xff]  ;;  %v2187_v57 = vld [vmem:[%s946_s3 + $0x10] sm:$0xff]  ;;  %1172 = vmatpush.bf16.xpose.msra.mxu1 %v2204_v61  ;;  %s1737_s1 = sshll.u32 %s2993_s9, 4  ;;  %s1721_s30 = scalar_lea.sflag [#allocation6], %s371_s6  ;;  %s1738_s1 = int_to_ptr.vmem [resolvable:$true] %s1737_s1 }
 0x17b   : > { %1080 = vmatpush.bf16.msra.mxu0 %v2199_v41  ;;  %v2188_v58 = vld [vmem:[%s946_s3 + $0x18] sm:$0xff]  ;;  %v2189_v60 = vld [vmem:[%s946_s3 + $0x20] sm:$0xff]  ;;  %v2190_v62 = vld [vmem:[%s946_s3 + $0x28] sm:$0xff] }
 0x17c   : > { %v2191_v14 = vld [vmem:[%s946_s3 + $0x30] sm:$0xff]  ;;  %v2192_v13 = vld [vmem:[%s946_s3 + $0x38] sm:$0xff]  ;;  %v2453_v17 = vld [vmem:[%s3400_s2] ss:$0 sm:$0xff] }
 0x17d   : > { %s2148_s22 = sshll.u32 %s3441_s27, 5 }
 0x17e   : > { %s1734_s13 = sadd.s32 %s2148_s22, %s2147_s5 }
 0x17f   : > { %1081 = vmatpush.bf16.msra.mxu0 %v2198_v42  ;;  %s2149_s7 = sshll.u32 %s1734_s13, 2 }
 0x180   : > { %s1736_s12 = scalar_lea.hbm %s3442_s15, %s2149_s7 }
 0x181   : > { %s1739_s3 = sshll.u32 %s1736_s12, 4  ;;  %s1740_s3 = int_to_ptr.hbm [resolvable:$true] %s1739_s3 }
 0x182   : > { %1173 = vmatpush.bf16.xpose.msra.mxu1 %v2203_v0  ;;  %s2653_s16 = sshra.s32 %s1740_s3, 4  ;;  %s2654_s16 = int_to_ptr.hbm [resolvable:$true] %s2653_s16 }
 0x183   : > { %1082 = vmatpush.bf16.msra.mxu0 %v2197_v43  ;;  %s2655_s17 = scalar_lea.hbm %s2654_s16, 64  ;;  %p2660_p2 = scmp.lt.s32.totalorder %s2654_s16, %s3442_s15 }
 0x184   : > { %p2656_p1 = scmp.ne.s32.totalorder %s2654_s16, %s2655_s17 }
 0x186   : > { %p2657_p11 = pnand %p2656_p1, %p2891_p6 }
 0x187   : > { %1083 = vmatpush.bf16.msra.mxu0 %v2196_v44 }
 0x188   : > { %p2658_p0 = pneg %p2657_p11 }
 0x18a   : > { %1174 = vmatpush.bf16.xpose.msra.mxu1 %v2202_v12 }
 0x18b   : > { %1084 = vmatpush.bf16.msra.mxu0 %v2195_v45 }
 0x18f   : > { %1085 = vmatpush.bf16.msra.mxu0 %v2194_v46 }
 0x192   : > { %1175 = vmatpush.bf16.xpose.msra.mxu1 %v2201_v15 }
 0x193   : > { %1086 = vmatpush.bf16.msra.mxu0 %v2193_v47 }
 0x196   : > { %1087 = vmatmul.bf16.vlgmr.msra.gmra.mxu0 %v2185_v59 }
 0x1a6   : > { %1092 = vmatmul.bf16.gmra.mxu0 %v2186_v63 }
 0x1b6   : > { %1097 = vmatmul.bf16.gmra.mxu0 %v2187_v57 }
 0x1c6   : > { %1102 = vmatmul.bf16.gmra.mxu0 %v2188_v58 }
 0x1d6   : > { %1107 = vmatmul.bf16.gmra.mxu0 %v2189_v60 }
 0x1e6   : > { %1112 = vmatmul.bf16.gmra.mxu0 %v2190_v62 }
 0x1f6   : > { %1117 = vmatmul.bf16.gmra.mxu0 %v2191_v14 }
 0x206   : > { %1122 = vmatmul.bf16.gmra.mxu0 %v2192_v13 }
 0x213   : > { %v1088_v16 = vpop.f32.mrf.mxu0 }
 0x214   : > { %v1089_v2 = vadd.f32 %v2453_v17, %v1088_v16 }
 0x21b   : > { %v1090_v1 = vpop.f32.mrf.mxu0 }
 0x21c   : > { %v1091_v18 = vadd.f32 %v2453_v17, %v1090_v1 }
 0x21e   : > { %v1128_v20 = vpack.c.bf16 %v1091_v18, %v1089_v2  ;;  %v2207_v18 = vld [vmem:[#allocation3 + $0x8] sm:$0xff] }
 0x220   : > { %1176 = vmatmul.bf16.vlgmr.msra.gmra.mxu1 %v1128_v20  ;;  %v2206_v20 = vld [vmem:[#allocation3 + $0x18] sm:$0xff] }
 0x223   : > { %v1093_v21 = vpop.f32.mrf.mxu0 }
 0x224   : > { %v1094_v19 = vadd.f32 %v2453_v17, %v1093_v21 }
 0x22b   : > { %v1095_v4 = vpop.f32.mrf.mxu0 }
 0x22c   : > { %v1096_v22 = vadd.f32 %v2453_v17, %v1095_v4 }
 0x22e   : > { %v1129_v23 = vpack.c.bf16 %v1096_v22, %v1094_v19  ;;  %v2205_v19 = vld [vmem:[#allocation3] sm:$0xff] }
 0x230   : > { %1181 = vmatmul.bf16.gmra.mxu1 %v1129_v23 }
 0x233   : > { %v1098_v6 = vpop.f32.mrf.mxu0 }
 0x234   : > { %v1099_v8 = vadd.f32 %v2453_v17, %v1098_v6 }
 0x23b   : > { %v1100_v7 = vpop.f32.mrf.mxu0 }
 0x23c   : > { %v1101_v10 = vadd.f32 %v2453_v17, %v1100_v7 }
 0x23e   : > { %v1130_v3 = vpack.c.bf16 %v1101_v10, %v1099_v8 }
 0x240   : > { %1186 = vmatmul.bf16.gmra.mxu1 %v1130_v3 }
 0x243   : > { %v1103_v48 = vpop.f32.mrf.mxu0 }
 0x244   : > { %v1104_v26 = vadd.f32 %v2453_v17, %v1103_v48 }
 0x24b   : > { %v1105_v24 = vpop.f32.mrf.mxu0 }
 0x24c   : > { %v1106_v27 = vadd.f32 %v2453_v17, %v1105_v24 }
 0x24e   : > { %v1131_v49 = vpack.c.bf16 %v1106_v27, %v1104_v26 }
 0x250   : > { %1191 = vmatmul.bf16.gmra.mxu1 %v1131_v49 }
 0x253   : > { %v1108_v25 = vpop.f32.mrf.mxu0 }
 0x254   : > { %v1109_v29 = vadd.f32 %v2453_v17, %v1108_v25 }
 0x25b   : > { %v1110_v28 = vpop.f32.mrf.mxu0 }
 0x25c   : > { %v1111_v50 = vadd.f32 %v2453_v17, %v1110_v28 }
 0x25e   : > { %v1132_v30 = vpack.c.bf16 %v1111_v50, %v1109_v29 }
 0x260   : > { %1196 = vmatmul.bf16.gmra.mxu1 %v1132_v30 }
 0x263   : > { %v1113_v32 = vpop.f32.mrf.mxu0 }
 0x264   : > { %v1114_v31 = vadd.f32 %v2453_v17, %v1113_v32 }
 0x26b   : > { %v1115_v33 = vpop.f32.mrf.mxu0 }
 0x26c   : > { %v1116_v34 = vadd.f32 %v2453_v17, %v1115_v33 }
 0x26e   : > { %v1133_v35 = vpack.c.bf16 %v1116_v34, %v1114_v31 }
 0x270   : > { %1201 = vmatmul.bf16.gmra.mxu1 %v1133_v35 }
 0x273   : > { %v1118_v5 = vpop.f32.mrf.mxu0 }
 0x274   : > { %v1119_v52 = vadd.f32 %v2453_v17, %v1118_v5 }
 0x27b   : > { %v1120_v51 = vpop.f32.mrf.mxu0 }
 0x27c   : > { %v1121_v53 = vadd.f32 %v2453_v17, %v1120_v51 }
 0x27e   : > { %v1134_v9 = vpack.c.bf16 %v1121_v53, %v1119_v52 }
 0x280   : > { %1206 = vmatmul.bf16.gmra.mxu1 %v1134_v9 }
 0x283   : > { %v1123_v54 = vpop.f32.mrf.mxu0 }
 0x284   : > { %v1124_v55 = vadd.f32 %v2453_v17, %v1123_v54 }
 0x28b   : > { %v1125_v11 = vpop.f32.mrf.mxu0 }
 0x28c   : > { %v1126_v36 = vadd.f32 %v2453_v17, %v1125_v11  ;;  %v2208_v17 = vld [vmem:[#allocation3 + $0x10] sm:$0xff] }
 0x28d   : > { %1406 = vmatpush.bf16.msra.mxu2 %v2208_v17 }
 0x28e   : > { %v1135_v38 = vpack.c.bf16 %v1126_v36, %v1124_v55 }
 0x290   : > { %1211 = vmatmul.bf16.gmra.mxu1 %v1135_v38 }
 0x291   : > { %1407 = vmatpush.bf16.msra.mxu2 %v2207_v18 }
 0x295   : > { %1408 = vmatpush.bf16.msra.mxu2 %v2206_v20 }
 0x299   : > { %1409 = vmatpush.bf16.msra.mxu2 %v2205_v19 }
 0x29d   : > { %v1177_v39 = vpop.f32.mrf.mxu1 }
 0x29e   : > { %v1218_v56 = vsel %vm1217_vm0, %v1177_v39, -inf }
 0x29f   : > { %1219 = vmax.xlane.f32.xlu0 %v1218_v56 }
 0x2a5   : > { %v1179_v37 = vpop.f32.mrf.mxu1 }
 0x2a6   : > { %v1221_v40 = vsel %vm1217_vm0, %v1179_v37, -inf }
 0x2a7   : > { %1222 = vmax.xlane.f32.xlu0 %v1221_v40 }
 0x2ad   : > { %v3210_v41 = vpop.f32.mrf.mxu1 }
 0x2ae   : > { %v1224_v42 = vsel %vm1217_vm0, %v3210_v41, -inf }
 0x2af   : > { %1225 = vmax.xlane.f32.xlu1 %v1224_v42 }
 0x2b5   : > { %v3214_v43 = vpop.f32.mrf.mxu1 }
 0x2b6   : > { %v1227_v44 = vsel %vm1217_vm0, %v3214_v43, -inf }
 0x2b7   : > { %1228 = vmax.xlane.f32.xlu1 %v1227_v44 }
 0x2bd   : > { %v3218_v45 = vpop.f32.mrf.mxu1 }
 0x2be   : > { %v1230_v46 = vsel %vm1217_vm0, %v3218_v45, -inf }
 0x2bf   : > { %1231 = vmax.xlane.f32.xlu2 %v1230_v46 }
 0x2c5   : > { %v3222_v47 = vpop.f32.mrf.mxu1 }
 0x2c6   : > { %v1233_v59 = vsel %vm1217_vm0, %v3222_v47, -inf }
 0x2c7   : > { %1234 = vmax.xlane.f32.xlu2 %v1233_v59 }
 0x2cd   : > { %v3226_v63 = vpop.f32.mrf.mxu1 }
 0x2ce   : > { %v1236_v57 = vsel %vm1217_vm0, %v3226_v63, -inf }
 0x2cf   : > { %1237 = vmax.xlane.f32.xlu0 %v1236_v57 }
 0x2d5   : > { %v3230_v58 = vpop.f32.mrf.mxu1 }
 0x2d6   : > { %v1239_v60 = vsel %vm1217_vm0, %v3230_v58, -inf }
 0x2d7   : > { %1240 = vmax.xlane.f32.xlu1 %v1239_v60 }
 0x2dd   : > { %v3234_v61 = vpop.f32.mrf.mxu1 }
 0x2de   : > { %v1242_v62 = vsel %vm1217_vm0, %v3234_v61, -inf }
 0x2df   : > { %1243 = vmax.xlane.f32.xlu2 %v1242_v62 }
 0x2e5   : > { %v3238_v0 = vpop.f32.mrf.mxu1 }
 0x2e6   : > { %v1245_v12 = vsel %vm1217_vm0, %v3238_v0, -inf }
 0x2e7   : > { %1246 = vmax.xlane.f32.xlu0 %v1245_v12 }
 0x2ed   : > { %v3242_v14 = vpop.f32.mrf.mxu1 }
 0x2ee   : > { %v1248_v15 = vsel %vm1217_vm0, %v3242_v14, -inf }
 0x2ef   : > { %1249 = vmax.xlane.f32.xlu1 %v1248_v15 }
 0x2f5   : > { %v3246_v13 = vpop.f32.mrf.mxu1 }
 0x2f6   : > { %v1251_v16 = vsel %vm1217_vm0, %v3246_v13, -inf }
 0x2f7   : > { %1252 = vmax.xlane.f32.xlu2 %v1251_v16 }
 0x2fd   : > { %v3250_v1 = vpop.f32.mrf.mxu1 }
 0x2fe   : > { %v1254_v2 = vsel %vm1217_vm0, %v3250_v1, -inf }
 0x2ff   : > { %1255 = vmax.xlane.f32.xlu0 %v1254_v2 }
 0x305   : > { %v3254_v21 = vpop.f32.mrf.mxu1 }
 0x306   : > { %v1257_v4 = vsel %vm1217_vm0, %v3254_v21, -inf }
 0x307   : > { %1258 = vmax.xlane.f32.xlu1 %v1257_v4 }
 0x30d   : > { %v3258_v22 = vpop.f32.mrf.mxu1 }
 0x30e   : > { %v1260_v23 = vsel %vm1217_vm0, %v3258_v22, -inf }
 0x30f   : > { %1261 = vmax.xlane.f32.xlu2 %v1260_v23 }
 0x312   : > { %v1220_v6 = vpop.xlane.xlu0 %1219 }
 0x313   : > { %v1266_v3 = vsub.f32 %v1177_v39, %v1220_v6 }
 0x315   : > { %v3262_v7 = vpop.f32.mrf.mxu1 }
 0x316   : > { %v1263_v8 = vsel %vm1217_vm0, %v3262_v7, -inf }
 0x317   : > { %1264 = vmax.xlane.f32.xlu0 %v1263_v8 }
 0x31a   : > { %v1223_v10 = vpop.xlane.xlu0 %1222 }
 0x31b   : > { %v1267_v48 = vsub.f32 %v1179_v37, %v1223_v10 }
 0x31d   : > { %v1282_v24 = vpack.c.bf16 %v1267_v48, %v1266_v3 }
 0x31f   : > { %v1290_v26 = vunpack.c.l.bf16 %v1282_v24  ;;  %v1291_v27 = vunpack.c.h.bf16 %v1282_v24 }
 0x321   : > { %v1306_v49 = vmul.f32 1.442695, %v1290_v26  ;;  %v1308_v25 = vmul.f32 1.442695, %v1291_v27 }
 0x322   : > { %v1226_v28 = vpop.xlane.xlu1 %1225 }
 0x323   : > { %2455 = vpow2.f32 %v1306_v49  ;;  %v1268_v32 = vsub.f32 %v3210_v41, %v1226_v28 }
 0x324   : > { %2457 = vpow2.f32 %v1308_v25 }
 0x329   : > { %v2456_v29 = vpop.eup %2455 }
 0x32a   : > { %v2458_v50 = vpop.eup %2457  ;;  %v1229_v30 = vpop.xlane.xlu1 %1228 }
 0x32b   : > { %v1269_v33 = vsub.f32 %v3214_v43, %v1229_v30  ;;  %v1338_v31 = vpack.c.bf16 %v2458_v50, %v2456_v29 }
 0x32d   : > { %v1283_v34 = vpack.c.bf16 %v1269_v33, %v1268_v32  ;;  %2106 = vmatmul.msk.bf16.vlgmr.msra.gmra.mxu2 %vm1217_vm0, %v1338_v31 }
 0x32f   : > { %v1292_v35 = vunpack.c.l.bf16 %v1283_v34  ;;  %v1293_v5 = vunpack.c.h.bf16 %v1283_v34 }
 0x331   : > { %v1310_v51 = vmul.f32 1.442695, %v1292_v35  ;;  %v1312_v52 = vmul.f32 1.442695, %v1293_v5 }
 0x332   : > { %v1232_v53 = vpop.xlane.xlu2 %1231 }
 0x333   : > { %2459 = vpow2.f32 %v1310_v51  ;;  %v1270_v55 = vsub.f32 %v3218_v45, %v1232_v53 }
 0x334   : > { %2461 = vpow2.f32 %v1312_v52 }
 0x339   : > { %v2460_v9 = vpop.eup %2459 }
 0x33a   : > { %v2462_v54 = vpop.eup %2461  ;;  %v1235_v11 = vpop.xlane.xlu2 %1234 }
 0x33b   : > { %v1271_v36 = vsub.f32 %v3222_v47, %v1235_v11  ;;  %v1339_v38 = vpack.c.bf16 %v2462_v54, %v2460_v9 }
 0x33d   : > { %v1284_v39 = vpack.c.bf16 %v1271_v36, %v1270_v55  ;;  %2107 = vmatmul.msk.bf16.gmra.mxu2 %vm1217_vm0, %v1339_v38 }
 0x33f   : > { %v1294_v56 = vunpack.c.l.bf16 %v1284_v39  ;;  %v1295_v37 = vunpack.c.h.bf16 %v1284_v39 }
 0x341   : > { %v1314_v40 = vmul.f32 1.442695, %v1294_v56  ;;  %v1316_v41 = vmul.f32 1.442695, %v1295_v37 }
 0x342   : > { %v1238_v42 = vpop.xlane.xlu0 %1237 }
 0x343   : > { %2463 = vpow2.f32 %v1314_v40  ;;  %v1272_v59 = vsub.f32 %v3226_v63, %v1238_v42  ;;  %v2778_v40 = vmov 2  }
 0x344   : > { %2465 = vpow2.f32 %v1316_v41  ;;  %2450 = vset.pattern.permute.xlu1 %v2778_v40  ;;  %2451 = vset.pattern.permute.xlu2 %v2778_v40 }
 0x345   : > { %2452 = vset.pattern.permute.xlu0 %v2778_v40 }
 0x349   : > { %v2464_v43 = vpop.eup %2463 }
 0x34a   : > { %v2466_v44 = vpop.eup %2465  ;;  %v1241_v46 = vpop.xlane.xlu1 %1240 }
 0x34b   : > { %v1273_v45 = vsub.f32 %v3230_v58, %v1241_v46  ;;  %v1340_v57 = vpack.c.bf16 %v2466_v44, %v2464_v43 }
 0x34d   : > { %v1285_v47 = vpack.c.bf16 %v1273_v45, %v1272_v59  ;;  %2108 = vmatmul.msk.bf16.gmra.mxu2 %vm1217_vm0, %v1340_v57 }
 0x34f   : > { %v1296_v60 = vunpack.c.l.bf16 %v1285_v47  ;;  %v1297_v62 = vunpack.c.h.bf16 %v1285_v47 }
 0x351   : > { %v1318_v12 = vmul.f32 1.442695, %v1296_v60  ;;  %v1320_v15 = vmul.f32 1.442695, %v1297_v62 }
 0x352   : > { %v1244_v16 = vpop.xlane.xlu2 %1243 }
 0x353   : > { %2467 = vpow2.f32 %v1318_v12  ;;  %v1274_v20 = vsub.f32 %v3234_v61, %v1244_v16 }
 0x354   : > { %2469 = vpow2.f32 %v1320_v15 }
 0x359   : > { %v2468_v17 = vpop.eup %2467 }
 0x35a   : > { %v2470_v2 = vpop.eup %2469  ;;  %v1247_v18 = vpop.xlane.xlu0 %1246 }
 0x35b   : > { %v1275_v63 = vsub.f32 %v3238_v0, %v1247_v18  ;;  %v1341_v4 = vpack.c.bf16 %v2470_v2, %v2468_v17  ;;  %v2216_v18 = vld [vmem:[#allocation10 + $0x38] sm:$0xff] }
 0x35c   : > { %1639 = vmatpush.bf16.msra.mxu3 %v2216_v18 }
 0x35d   : > { %v1286_v58 = vpack.c.bf16 %v1275_v63, %v1274_v20  ;;  %2109 = vmatmul.msk.bf16.gmra.mxu2 %vm1217_vm0, %v1341_v4  ;;  %v2215_v4 = vld [vmem:[#allocation10 + $0x30] sm:$0xff] }
 0x35f   : > { %v1298_v19 = vunpack.c.l.bf16 %v1286_v58  ;;  %v1299_v23 = vunpack.c.h.bf16 %v1286_v58  ;;  %v2214_v58 = vld [vmem:[#allocation10 + $0x28] sm:$0xff] }
 0x360   : > { %1640 = vmatpush.bf16.msra.mxu3 %v2215_v4 }
 0x361   : > { %v1322_v6 = vmul.f32 1.442695, %v1298_v19  ;;  %v1324_v8 = vmul.f32 1.442695, %v1299_v23 }
 0x362   : > { %v1250_v10 = vpop.xlane.xlu1 %1249 }
 0x363   : > { %2471 = vpow2.f32 %v1322_v6  ;;  %v1276_v26 = vsub.f32 %v3242_v14, %v1250_v10  ;;  %v2213_v6 = vld [vmem:[#allocation10 + $0x20] sm:$0xff] }
 0x364   : > { %2473 = vpow2.f32 %v1324_v8  ;;  %1641 = vmatpush.bf16.msra.mxu3 %v2214_v58  ;;  %v2212_v8 = vld [vmem:[#allocation10 + $0x18] sm:$0xff] }
 0x368   : > { %1642 = vmatpush.bf16.msra.mxu3 %v2213_v6 }
 0x369   : > { %v2472_v3 = vpop.eup %2471 }
 0x36a   : > { %v2474_v48 = vpop.eup %2473  ;;  %v1253_v24 = vpop.xlane.xlu2 %1252 }
 0x36b   : > { %v1277_v61 = vsub.f32 %v3246_v13, %v1253_v24  ;;  %v1342_v27 = vpack.c.bf16 %v2474_v48, %v2472_v3  ;;  %v2211_v48 = vld [vmem:[#allocation10 + $0x10] sm:$0xff]  ;;  %v2210_v24 = vld [vmem:[#allocation10 + $0x8] sm:$0xff] }
 0x36c   : > { %1643 = vmatpush.bf16.msra.mxu3 %v2212_v8 }
 0x36d   : > { %v1287_v0 = vpack.c.bf16 %v1277_v61, %v1276_v26  ;;  %2110 = vmatmul.msk.bf16.gmra.mxu2 %vm1217_vm0, %v1342_v27  ;;  %v2209_v27 = vld [vmem:[#allocation10] sm:$0xff] }
 0x36f   : > { %v1300_v49 = vunpack.c.l.bf16 %v1287_v0  ;;  %v1301_v25 = vunpack.c.h.bf16 %v1287_v0 }
 0x370   : > { %1644 = vmatpush.bf16.msra.mxu3 %v2211_v48 }
 0x371   : > { %v1326_v28 = vmul.f32 1.442695, %v1300_v49  ;;  %v1328_v29 = vmul.f32 1.442695, %v1301_v25 }
 0x372   : > { %v1256_v50 = vpop.xlane.xlu0 %1255 }
 0x373   : > { %2475 = vpow2.f32 %v1326_v28  ;;  %v1278_v31 = vsub.f32 %v3250_v1, %v1256_v50 }
 0x374   : > { %2477 = vpow2.f32 %v1328_v29  ;;  %1645 = vmatpush.bf16.msra.mxu3 %v2210_v24 }
 0x378   : > { %1646 = vmatpush.bf16.msra.mxu3 %v2209_v27 }
 0x379   : > { %v2476_v30 = vpop.eup %2475 }
 0x37a   : > { %v2478_v32 = vpop.eup %2477  ;;  %v1259_v33 = vpop.xlane.xlu1 %1258 }
 0x37b   : > { %v1279_v14 = vsub.f32 %v3254_v21, %v1259_v33  ;;  %v1343_v34 = vpack.c.bf16 %v2478_v32, %v2476_v30 }
 0x37d   : > { %v1288_v13 = vpack.c.bf16 %v1279_v14, %v1278_v31  ;;  %2111 = vmatmul.msk.bf16.gmra.mxu2 %vm1217_vm0, %v1343_v34 }
 0x37f   : > { %v1302_v35 = vunpack.c.l.bf16 %v1288_v13  ;;  %v1303_v5 = vunpack.c.h.bf16 %v1288_v13 }
 0x381   : > { %v1330_v51 = vmul.f32 1.442695, %v1302_v35  ;;  %v1332_v52 = vmul.f32 1.442695, %v1303_v5 }
 0x382   : > { %v1262_v53 = vpop.xlane.xlu2 %1261 }
 0x383   : > { %2479 = vpow2.f32 %v1330_v51  ;;  %v1280_v55 = vsub.f32 %v3258_v22, %v1262_v53 }
 0x384   : > { %2481 = vpow2.f32 %v1332_v52 }
 0x389   : > { %v2480_v9 = vpop.eup %2479 }
 0x38a   : > { %v2482_v54 = vpop.eup %2481  ;;  %v1265_v11 = vpop.xlane.xlu0 %1264 }
 0x38b   : > { %v1281_v1 = vsub.f32 %v3262_v7, %v1265_v11  ;;  %v1344_v36 = vpack.c.bf16 %v2482_v54, %v2480_v9 }
 0x38d   : > { %v1289_v21 = vpack.c.bf16 %v1281_v1, %v1280_v55  ;;  %2112 = vmatmul.msk.bf16.gmra.mxu2 %vm1217_vm0, %v1344_v36 }
 0x38f   : > { %v1304_v38 = vunpack.c.l.bf16 %v1289_v21  ;;  %v1305_v39 = vunpack.c.h.bf16 %v1289_v21 }
 0x391   : > { %v1334_v56 = vmul.f32 1.442695, %v1304_v38  ;;  %v1336_v37 = vmul.f32 1.442695, %v1305_v39 }
 0x393   : > { %2483 = vpow2.f32 %v1334_v56 }
 0x394   : > { %2485 = vpow2.f32 %v1336_v37 }
 0x399   : > { %v2484_v41 = vpop.eup %2483 }
 0x39a   : > { %v2486_v42 = vpop.eup %2485 }
 0x39b   : > { %v1345_v43 = vpack.c.bf16 %v2486_v42, %v2484_v41 }
 0x39d   : > { %2113 = vmatmul.msk.bf16.gmra.mxu2 %vm1217_vm0, %v1345_v43 }
 0x3b0   : > { %v3288_v22 = vpop.f32.mrf.mxu2 }
 0x3b1   : > { %2487 = vrcp.f32 %v3288_v22 }
 0x3b7   : > { %v2488_v7 = vpop.eup %2487 }
 0x3b8   : > { %v3291_v44 = vpop.f32.mrf.mxu2  ;;  %1469 = vperm.xlu1 %2450, %v2488_v7  }
 0x3b9   : > { %2489 = vrcp.f32 %v3291_v44 }
 0x3bf   : > { %v2490_v46 = vpop.eup %2489 }
 0x3c0   : > { %v3294_v59 = vpop.f32.mrf.mxu2  ;;  %1474 = vperm.xlu2 %2451, %v2490_v46  }
 0x3c1   : > { %2491 = vrcp.f32 %v3294_v59 }
 0x3c7   : > { %v2492_v45 = vpop.eup %2491 }
 0x3c8   : > { %v3297_v57 = vpop.f32.mrf.mxu2  ;;  %1479 = vperm.xlu0 %2452, %v2492_v45  }
 0x3c9   : > { %2493 = vrcp.f32 %v3297_v57 }
 0x3cf   : > { %v2494_v47 = vpop.eup %2493 }
 0x3d0   : > { %v3300_v60 = vpop.f32.mrf.mxu2  ;;  %1484 = vperm.xlu2 %2451, %v2494_v47  }
 0x3d1   : > { %2495 = vrcp.f32 %v3300_v60 }
 0x3d7   : > { %v2496_v62 = vpop.eup %2495 }
 0x3d8   : > { %v3303_v12 = vpop.f32.mrf.mxu2  ;;  %1489 = vperm.xlu1 %2450, %v2496_v62  }
 0x3d9   : > { %2497 = vrcp.f32 %v3303_v12 }
 0x3df   : > { %v2498_v15 = vpop.eup %2497 }
 0x3e0   : > { %v3306_v16 = vpop.f32.mrf.mxu2  ;;  %1494 = vperm.xlu2 %2451, %v2498_v15  }
 0x3e1   : > { %2499 = vrcp.f32 %v3306_v16 }
 0x3e7   : > { %v2500_v17 = vpop.eup %2499 }
 0x3e8   : > { %v3309_v2 = vpop.f32.mrf.mxu2  ;;  %1499 = vperm.xlu1 %2450, %v2500_v17  }
 0x3e9   : > { %2501 = vrcp.f32 %v3309_v2 }
 0x3ef   : > { %v2502_v20 = vpop.eup %2501 }
 0x3f0   : > { %v3312_v63 = vpop.f32.mrf.mxu2  ;;  %1504 = vperm.xlu2 %2451, %v2502_v20  }
 0x3f1   : > { %2503 = vrcp.f32 %v3312_v63 }
 0x3f7   : > { %v2504_v19 = vpop.eup %2503 }
 0x3f8   : > { %v3315_v23 = vpop.f32.mrf.mxu2  ;;  %1509 = vperm.xlu1 %2450, %v2504_v19  }
 0x3f9   : > { %2505 = vrcp.f32 %v3315_v23 }
 0x3ff   : > { %v2506_v10 = vpop.eup %2505 }
 0x400   : > { %v3318_v3 = vpop.f32.mrf.mxu2  ;;  %1514 = vperm.xlu0 %2452, %v2506_v10  }
 0x401   : > { %2507 = vrcp.f32 %v3318_v3 }
 0x407   : > { %v2508_v26 = vpop.eup %2507 }
 0x408   : > { %v1438_v61 = vpop.f32.mrf.mxu2  ;;  %1519 = vperm.xlu2 %2451, %v2508_v26  }
 0x409   : > { %2509 = vrcp.f32 %v1438_v61 }
 0x40f   : > { %v2510_v0 = vpop.eup %2509 }
 0x410   : > { %1524 = vperm.xlu1 %2450, %v2510_v0   ;;  %v1441_v49 = vpop.f32.mrf.mxu2 }
 0x411   : > { %2511 = vrcp.f32 %v1441_v49 }
 0x417   : > { %v2512_v25 = vpop.eup %2511 }
 0x418   : > { %v1443_v28 = vpop.f32.mrf.mxu2  ;;  %1529 = vperm.xlu0 %2452, %v2512_v25  }
 0x419   : > { %2513 = vrcp.f32 %v1443_v28 }
 0x41a   : > { %v1475_v32 = vpop.permute.xlu2 %1474 }
 0x41b   : > { %v1548_v14 = vmul.f32 %v1475_v32, %v3291_v44 }
 0x41f   : > { %v2514_v29 = vpop.eup %2513 }
 0x420   : > { %1534 = vperm.xlu2 %2451, %v2514_v29   ;;  %v1446_v50 = vpop.f32.mrf.mxu2 }
 0x421   : > { %2515 = vrcp.f32 %v1446_v50 }
 0x427   : > { %v2516_v30 = vpop.eup %2515 }
 0x428   : > { %1539 = vperm.xlu1 %2450, %v2516_v30   ;;  %v1448_v33 = vpop.f32.mrf.mxu2 }
 0x429   : > { %2517 = vrcp.f32 %v1448_v33 }
 0x42a   : > { %v1470_v31 = vpop.permute.xlu1 %1469  ;;  %v1485_v5 = vpop.permute.xlu2 %1484 }
 0x42b   : > { %v1547_v34 = vmul.f32 %v1470_v31, %v3288_v22  ;;  %v1550_v52 = vmul.f32 %v1485_v5, %v3297_v57 }
 0x42d   : > { %v1563_v13 = vpack.c.bf16 %v1548_v14, %v1547_v34 }
 0x42f   : > { %v2518_v35 = vpop.eup %2517  ;;  %1647 = vmatmul.bf16.vlgmr.msra.gmra.mxu3 %v1563_v13 }
 0x430   : > { %1544 = vperm.xlu0 %2452, %v2518_v35  }
 0x43a   : > { %v1480_v51 = vpop.permute.xlu0 %1479  ;;  %v1495_v54 = vpop.permute.xlu2 %1494 }
 0x43b   : > { %v1549_v53 = vmul.f32 %v1480_v51, %v3294_v59  ;;  %v1552_v55 = vmul.f32 %v1495_v54, %v3303_v12 }
 0x43d   : > { %v1564_v9 = vpack.c.bf16 %v1550_v52, %v1549_v53 }
 0x43f   : > { %1652 = vmatmul.bf16.gmra.mxu3 %v1564_v9 }
 0x44a   : > { %v1490_v11 = vpop.permute.xlu1 %1489  ;;  %v1505_v21 = vpop.permute.xlu2 %1504 }
 0x44b   : > { %v1551_v1 = vmul.f32 %v1490_v11, %v3300_v60  ;;  %v1554_v39 = vmul.f32 %v1505_v21, %v3309_v2 }
 0x44d   : > { %v1565_v36 = vpack.c.bf16 %v1552_v55, %v1551_v1 }
 0x44f   : > { %1657 = vmatmul.bf16.gmra.mxu3 %v1565_v36 }
 0x45a   : > { %v1500_v38 = vpop.permute.xlu1 %1499 }
 0x45b   : > { %v1553_v56 = vmul.f32 %v1500_v38, %v3306_v16 }
 0x45d   : > { %v1566_v37 = vpack.c.bf16 %v1554_v39, %v1553_v56 }
 0x45f   : > { %1662 = vmatmul.bf16.gmra.mxu3 %v1566_v37 }
 0x462   : > { %v1520_v7 = vpop.permute.xlu2 %1519 }
 0x463   : > { %v1557_v46 = vmul.f32 %v1520_v7, %v3318_v3 }
 0x46a   : > { %v1510_v40 = vpop.permute.xlu1 %1509 }
 0x46b   : > { %v1555_v42 = vmul.f32 %v1510_v40, %v3312_v63  ;;  %v2454_v63 = vld [vmem:[%s3440_s24] ss:$0 sm:$0xff]  ;;  %s2659_s24 = scalar_lea.hbm %s3442_s15, 256 }
 0x46c   : > { %p2661_p3 = scmp.lt.s32.totalorder %s2659_s24, %s2655_s17 }
 0x46e   : > { %p2662_p5 = por %p2661_p3, %p2660_p2 }
 0x470   : > { %p2663_p7 = pnand %p2662_p5, %p2658_p0 }
 0x472   : > { %v1515_v41 = vpop.permute.xlu0 %1514 }
 0x473   : > { %v1556_v43 = vmul.f32 %v1515_v41, %v3315_v23 }
 0x475   : > { %v1567_v22 = vpack.c.bf16 %v1556_v43, %v1555_v42 }
 0x477   : > { %1667 = vmatmul.bf16.gmra.mxu3 %v1567_v22 }
 0x47a   : > { %v1535_v47 = vpop.permute.xlu2 %1534 }
 0x47b   : > { %v1560_v62 = vmul.f32 %v1535_v47, %v1443_v28 }
 0x482   : > { %v1525_v44 = vpop.permute.xlu1 %1524 }
 0x483   : > { %v1558_v59 = vmul.f32 %v1525_v44, %v1438_v61 }
 0x485   : > { %v1568_v45 = vpack.c.bf16 %v1558_v59, %v1557_v46 }
 0x487   : > { %1672 = vmatmul.bf16.gmra.mxu3 %v1568_v45 }
 0x48a   : > { %v1530_v57 = vpop.permute.xlu0 %1529 }
 0x48b   : > { %v1559_v60 = vmul.f32 %v1530_v57, %v1441_v49 }
 0x48d   : > { %v1569_v12 = vpack.c.bf16 %v1560_v62, %v1559_v60 }
 0x497   : > { %1677 = vmatmul.bf16.gmra.mxu3 %v1569_v12 }
 0x49a   : > { %v1540_v15 = vpop.permute.xlu1 %1539 }
 0x49b   : > { %v1561_v17 = vmul.f32 %v1540_v15, %v1446_v50 }
 0x4a2   : > { %v1545_v16 = vpop.permute.xlu0 %1544 }
 0x4a3   : > { %v1562_v2 = vmul.f32 %v1545_v16, %v1448_v33 }
 0x4a5   : > { %v1570_v18 = vpack.c.bf16 %v1562_v2, %v1561_v17 }
 0x4a7   : > { %1682 = vmatmul.bf16.gmra.mxu3 %v1570_v18 }
 0x4b2   : > { %v1648_v20 = vpop.f32.mrf.mxu3 }
 0x4b3   : > { %v1649_v58 = vadd.f32 %v2454_v63, %v1648_v20 }
 0x4ba   : > { %v1650_v4 = vpop.f32.mrf.mxu3 }
 0x4bb   : > { %v1651_v19 = vadd.f32 %v2454_v63, %v1650_v4 }
 0x4bd   : > { %v2260_v23 = vpack.c.bf16 %v1651_v19, %v1649_v58 }
 0x4bf   : > { %2261 = vst [vmem:[%s2993_s9] sm:$0xff] %v2260_v23  }
 0x4c2   : > { %v1653_v6 = vpop.f32.mrf.mxu3 }
 0x4c3   : > { %v1654_v10 = vadd.f32 %v2454_v63, %v1653_v6 }
 0x4ca   : > { %v1655_v8 = vpop.f32.mrf.mxu3 }
 0x4cb   : > { %v1656_v3 = vadd.f32 %v2454_v63, %v1655_v8 }
 0x4cd   : > { %v2265_v48 = vpack.c.bf16 %v1656_v3, %v1654_v10 }
 0x4cf   : > { %2303 = vst [vmem:[%s2993_s9 + $0x8] sm:$0xff] %v2265_v48  }
 0x4d2   : > { %v1658_v24 = vpop.f32.mrf.mxu3 }
 0x4d3   : > { %v1659_v61 = vadd.f32 %v2454_v63, %v1658_v24 }
 0x4da   : > { %v1660_v26 = vpop.f32.mrf.mxu3 }
 0x4db   : > { %v1661_v27 = vadd.f32 %v2454_v63, %v1660_v26 }
 0x4dd   : > { %v2270_v0 = vpack.c.bf16 %v1661_v27, %v1659_v61 }
 0x4df   : > { %2304 = vst [vmem:[%s2993_s9 + $0x10] sm:$0xff] %v2270_v0  }
 0x4e2   : > { %v1663_v49 = vpop.f32.mrf.mxu3 }
 0x4e3   : > { %v1664_v28 = vadd.f32 %v2454_v63, %v1663_v49 }
 0x4ea   : > { %v1665_v25 = vpop.f32.mrf.mxu3 }
 0x4eb   : > { %v1666_v29 = vadd.f32 %v2454_v63, %v1665_v25 }
 0x4ed   : > { %v2275_v50 = vpack.c.bf16 %v1666_v29, %v1664_v28 }
 0x4ef   : > { %2305 = vst [vmem:[%s2993_s9 + $0x18] sm:$0xff] %v2275_v50  }
 0x4fa   : > { %v1668_v30 = vpop.f32.mrf.mxu3 }
 0x4fb   : > { %v1669_v33 = vadd.f32 %v2454_v63, %v1668_v30 }
 0x502   : > { %v1670_v32 = vpop.f32.mrf.mxu3 }
 0x503   : > { %v1671_v31 = vadd.f32 %v2454_v63, %v1670_v32 }
 0x505   : > { %v2280_v14 = vpack.c.bf16 %v1671_v31, %v1669_v33 }
 0x507   : > { %2306 = vst [vmem:[%s2993_s9 + $0x20] sm:$0xff] %v2280_v14  }
 0x50a   : > { %v1673_v34 = vpop.f32.mrf.mxu3 }
 0x50b   : > { %v1674_v35 = vadd.f32 %v2454_v63, %v1673_v34 }
 0x512   : > { %v1675_v13 = vpop.f32.mrf.mxu3 }
 0x513   : > { %v1676_v5 = vadd.f32 %v2454_v63, %v1675_v13 }
 0x515   : > { %v2285_v51 = vpack.c.bf16 %v1676_v5, %v1674_v35 }
 0x517   : > { %2307 = vst [vmem:[%s2993_s9 + $0x28] sm:$0xff] %v2285_v51  }
 0x51a   : > { %v1678_v52 = vpop.f32.mrf.mxu3 }
 0x51b   : > { %v1679_v9 = vadd.f32 %v2454_v63, %v1678_v52 }
 0x522   : > { %v1680_v53 = vpop.f32.mrf.mxu3 }
 0x523   : > { %v1681_v54 = vadd.f32 %v2454_v63, %v1680_v53 }
 0x525   : > { %v2290_v11 = vpack.c.bf16 %v1681_v54, %v1679_v9 }
 0x527   : > { %2308 = vst [vmem:[%s2993_s9 + $0x30] sm:$0xff] %v2290_v11  }
 0x52a   : > { %v1683_v55 = vpop.f32.mrf.mxu3 }
 0x52b   : > { %v1684_v36 = vadd.f32 %v2454_v63, %v1683_v55 }
 0x532   : > { %v1685_v1 = vpop.f32.mrf.mxu3 }
 0x533   : > { %v1686_v21 = vadd.f32 %v2454_v63, %v1685_v1 }
 0x535   : > { %v2295_v38 = vpack.c.bf16 %v1686_v21, %v1684_v36 }
 0x537   : > { %2309 = vst [vmem:[%s2993_s9 + $0x38] sm:$0xff] %v2295_v38  }
 0x538   : > { %2666 = shalt.err (!%p2663_p7)
}
 0x539   : > { %s2779_s6 = smov 64   ;;  %s2780_s9 = smov 4  }
 0x53a   : > { %2324 = dma.vmem_to_hbm [thread:$0]  (%p2891_p6), %s1738_s1, 1024, %s1740_s3, %s1721_s30, %s2779_s6, %s2779_s6, %s2780_s9  }
 0x53b PF: > { %s3444_s22 = sld [smem:[#allocation17_spill]]  ;;  %p2351_p8 = scmp.ge.s32.totalorder %s2769_s11, 2 }
 0x53d   : > { %p2341_p9 = pnand %p2351_p8, %p2897_p10 }
 0x53f   : > { %p2342_p12 = pneg %p2341_p9 }
 0x541   : > { %s1754_s7 = sand.u32 1, %s3444_s22  }
 0x542   : > { %s1755_s8 = scalar_lea.sflag [#allocation6], %s1754_s7 }
 0x543   : > { %2724 = dma.done.wait (%p2342_p12), %s1755_s8, 1024  }
 0x544   : > { %2726 = vsyncadd (%p2342_p12), %s1755_s8, 4294966272  ;;  %s25_s11 = sadd.s32 1, %s2769_s11   ;;  %s3446_s30 = sld [smem:[#allocation19_spill]] }
 0x545   : > { %p22_p13 = scmp.ge.s32.totalorder %s25_s11, 6   ;;  %s3447_s9 = sld [smem:[#allocation22_spill]] }
 0x546   : > { %s3448_s14 = sld [smem:[#allocation23_spill]]  ;;  %s3449_s24 = smov %s2733_s25 }
 0x547   : > { %s3450_s25 = smov %s2737_s26  ;;  %s3451_s26 = smov %s2961_s20 }
 0x548   : > { %s3452_s27 = smov %s2745_s28  ;;  %s3453_s28 = smov %s2749_s29 }
 0x549   : > { %s3454_s29 = smov %s2958_s19  ;;  %s3455_s8 = smov %s2765_s10 }
 0x54a   :  { %24 = sbr.rel (!%p22_p13) target bundleno = 17 (0x11), region = 110 }
 0x54c   : > { %s3456_s10 = smov %s3448_s14 }
 0x54f   :  { %1761 = vsyncpa [#allocation5], 1 }
 0x550   :  { %1763 = vsyncpa [#allocation5 + $0x1], 1 }
 0x551   :  { %1764 = vsyncpa [#allocation8], 1 }
 0x552   :  { %1765 = vsyncpa [#allocation11], 1 }
 0x553   :  { %1766 = vsyncpa [#allocation6], 1 }
 0x554   :  { %1768 = vsyncpa [#allocation6 + $0x1], 1 }

</bundles_post_ra>
